<compile_context>
chip_gen: v7x
topology: tpu7x:2x2x1
jax: 0.10.0
libtpu: 0.0.40
codegen_flags: <defaults>
</compile_context>

<pallas_src>
import functools

import jax
import jax.numpy as jnp
import numpy as np
from jax.experimental import pallas as pl
from jax.experimental.pallas import tpu as pltpu


# ---------------------------------------------------------------------------
# Pallas kernel
# ---------------------------------------------------------------------------
def _spatial_attention_kernel(w_ref, mask_ref, x_ref, o_ref,
                              padmax_ref, padmean_ref,
                              *, W, k, HW_pad, pad_lane):
    """Nb batch elements per grid step.

    w_ref    : SMEM (2*k*k,) f32   conv weights, index = c*k*k + kh*k + kw
                                   (c = 0 -> max channel, c = 1 -> mean channel)
    mask_ref : VMEM (k, HW_pad) f32 {0,1} column-validity mask per kw offset
    x_ref    : VMEM (Nb, C, HW_pad) f32
    o_ref    : VMEM (Nb, 1, HW_pad) f32
    padmax_ref / padmean_ref : VMEM (Nb, pad_lane + HW_pad + pad_lane) f32
    """
    p = k // 2
    Nb = x_ref.shape[0]

    x = x_ref[...]                                   # (Nb, C, HW_pad)
    max_map = jnp.max(x, axis=1)                     # (Nb, HW_pad) channel max
    mean_map = jnp.mean(x, axis=1)                   # (Nb, HW_pad) channel mean

    # Zero only the two guard-pad regions (the interior is fully overwritten
    # below).  Done every step for correctness under megacore grid splitting.
    zeros_pad = jnp.zeros((Nb, pad_lane), jnp.float32)
    padmax_ref[:, pl.ds(0, pad_lane)] = zeros_pad
    padmax_ref[:, pl.ds(pad_lane + HW_pad, pad_lane)] = zeros_pad
    padmean_ref[:, pl.ds(0, pad_lane)] = zeros_pad
    padmean_ref[:, pl.ds(pad_lane + HW_pad, pad_lane)] = zeros_pad

    # Lane-aligned interior stores of the pooled maps.
    padmax_ref[:, pl.ds(pad_lane, HW_pad)] = max_map
    padmean_ref[:, pl.ds(pad_lane, HW_pad)] = mean_map

    # k*k-tap conv as statically shifted reads.  Column validity depends only
    # on kw, so accumulate the kh taps unmasked and apply one mask per kw;
    # out-of-range rows read the zero guard pads and contribute 0 naturally.
    acc = jnp.zeros((Nb, HW_pad), jnp.float32)
    for kw in range(k):
        dw = kw - p
        col_sum = jnp.zeros((Nb, HW_pad), jnp.float32)
        for kh in range(k):
            dh = kh - p
            off = dh * W + dw                        # flattened spatial shift
            w_max = w_ref[kh * k + kw]               # scalar reads from SMEM
            w_mean = w_ref[k * k + kh * k + kw]
            sh_max = padmax_ref[:, pl.ds(pad_lane + off, HW_pad)]
            sh_mean = padmean_ref[:, pl.ds(pad_lane + off, HW_pad)]
            col_sum = col_sum + w_max * sh_max + w_mean * sh_mean
        mask_row = mask_ref[pl.ds(kw, 1), :]         # (1, HW_pad) f32 {0,1}
        acc = acc + mask_row * col_sum

    o_ref[:, 0, :] = jax.nn.sigmoid(acc)


# ---------------------------------------------------------------------------
# Wrapper
# ---------------------------------------------------------------------------
def _choose_batch_block(N, C, HW_pad, target_bytes=1 << 20):
    """Batch elements per grid step: ~1 MB input blocks, but keep >= 2 steps."""
    per_n = max(1, C * HW_pad * 4)
    nb = max(1, min(N, target_bytes // per_n))
    if N >= 2:
        nb = min(nb, N // 2)          # keep >= 2 grid steps (v7x megacore)
    nb = max(nb, 1)
    while N % nb:
        nb -= 1
    return nb


def spatial_attention(x_nchw, conv_w, kernel_size):
    """x: (N, C, H, W) f32, conv_w: (1, 2, k, k) f32 -> (N, 1, H, W) weights."""
    assert kernel_size in (3, 7), "kernel size must be 3 or 7"
    N, C, H, W = x_nchw.shape
    k = kernel_size
    p = k // 2
    HW = H * W
    HW_pad = ((HW + 127) // 128) * 128          # lane-dense flattened spatial

    # Guard padding for the shifted reads, rounded to a lane multiple so the
    # interior store is lane-aligned (covers the largest |shift| = p*W + p).
    pad_lane = max(128, ((p * W + p + 127) // 128) * 128)
    pad_total = pad_lane + HW_pad + pad_lane

    x_flat = x_nchw.reshape(N, C, HW).astype(jnp.float32)
    if HW_pad != HW:
        x_flat = jnp.pad(x_flat, ((0, 0), (0, 0), (0, HW_pad - HW)))
    w_flat = conv_w.reshape(2 * k * k).astype(jnp.float32)

    # Precomputed f32 {0,1} column-validity masks, one row per kw offset.
    flat = np.arange(HW_pad, dtype=np.int64)
    col = flat % W
    in_image = flat < HW
    mask_np = np.zeros((k, HW_pad), np.float32)
    for kw in range(k):
        dw = kw - p
        valid = in_image & (col + dw >= 0) & (col + dw < W)
        mask_np[kw] = valid.astype(np.float32)
    col_masks = jnp.asarray(mask_np)

    Nb = _choose_batch_block(N, C, HW_pad)
    grid = (N // Nb,)

    x_block_bytes = Nb * C * HW_pad * 4
    out_block_bytes = Nb * HW_pad * 4
    mask_bytes = k * HW_pad * 4
    scratch_bytes = 2 * Nb * pad_total * 4
    vmem_limit = (2 * (x_block_bytes + out_block_bytes)
                  + 2 * mask_bytes + scratch_bytes + (4 << 20))
    vmem_limit = int(min(max(vmem_limit, 8 << 20), 48 << 20))

    kernel = functools.partial(_spatial_attention_kernel,
                               W=W, k=k, HW_pad=HW_pad, pad_lane=pad_lane)

    cost = pl.CostEstimate(
        flops=int(N * (2 * C * HW_pad + 4 * k * k * HW_pad + 2 * k * HW_pad)),
        transcendentals=int(N * HW_pad),
        bytes_accessed=int(x_flat.size * 4 + N * HW_pad * 4
                           + col_masks.size * 4 + w_flat.size * 4),
    )

    out_flat = pl.pallas_call(
        kernel,
        out_shape=jax.ShapeDtypeStruct((N, 1, HW_pad), jnp.float32),
        grid=grid,
        in_specs=[
            pl.BlockSpec(memory_space=pltpu.MemorySpace.SMEM),   # weights
            pl.BlockSpec((k, HW_pad), lambda n: (0, 0)),         # column masks
            pl.BlockSpec((Nb, C, HW_pad), lambda n: (n, 0, 0)),  # x block
        ],
        out_specs=pl.BlockSpec((Nb, 1, HW_pad), lambda n: (n, 0, 0)),
        scratch_shapes=[
            pltpu.VMEM((Nb, pad_total), jnp.float32),            # padded max
            pltpu.VMEM((Nb, pad_total), jnp.float32),            # padded mean
        ],
        compiler_params=pltpu.CompilerParams(
            dimension_semantics=("parallel",),
            vmem_limit_bytes=vmem_limit,
        ),
        cost_estimate=cost,
    )(w_flat, col_masks, x_flat)

    return out_flat[:, :, :HW].reshape(N, 1, H, W)


# ---------------------------------------------------------------------------
# Pure-JAX reference (sanity check)
# ---------------------------------------------------------------------------
def ref_spatial_attention(x, conv_w, kernel_size):
    p = kernel_size // 2
    mx = jnp.max(x, axis=1, keepdims=True)
    mn = jnp.mean(x, axis=1, keepdims=True)
    v = jnp.concatenate([mx, mn], axis=1)                        # (N, 2, H, W)
    out = jax.lax.conv_general_dilated(
        v, conv_w, (1, 1), [(p, p), (p, p)],
        dimension_numbers=("NCHW", "OIHW", "NCHW"))
    return jax.nn.sigmoid(out)


# ---------------------------------------------------------------------------
if __name__ == "__main__":
    key = jax.random.PRNGKey(0)
    kx, kw = jax.random.split(key)

    N, C, H, W = 2, 4, 16, 16
    kernel_size = 7

    x = jax.random.normal(kx, (N, C, H, W), jnp.float32)
    conv_w = 0.3 * jax.random.normal(kw, (1, 2, kernel_size, kernel_size),
                                     jnp.float32)

    out = jax.block_until_ready(spatial_attention(x, conv_w, kernel_size))
    ref = jax.block_until_ready(ref_spatial_attention(x, conv_w, kernel_size))

    assert out.shape == (N, 1, H, W), out.shape
    if not np.allclose(np.asarray(out), np.asarray(ref), rtol=1e-3, atol=1e-3):
        raise ValueError("Pallas output mismatches pure-JAX reference")

    print("KERNEL_OK")
</pallas_src>

<mosaic_0001>
module attributes {stable_mosaic.version = 11 : i64} {
  func.func @_spatial_attention_kernel(%arg0: i32, %arg1: memref<98xf32, #tpu.memory_space<smem>>, %arg2: memref<7x256xf32, #tpu.memory_space<vmem>>, %arg3: memref<1x4x256xf32, #tpu.memory_space<vmem>>, %arg4: memref<1x1x256xf32, #tpu.memory_space<vmem>>, %arg5: memref<1x512xf32, #tpu.memory_space<vmem>>, %arg6: memref<1x512xf32, #tpu.memory_space<vmem>>) attributes {dimension_semantics = [#tpu.dimension_semantics<parallel>], iteration_bounds = array<i64: 2>, scalar_prefetch = 0 : i64, scratch_operands = 2 : i64, tpu.core_type = #tpu.core_type<tc>, window_params = [{transform_indices = @transform_0, window_bounds = array<i64: 98>}, {pipeline_mode = #tpu.pipeline_mode<synchronous>, transform_indices = @transform_1, window_bounds = array<i64: 7, 256>}, {transform_indices = @transform_2, window_bounds = array<i64: 1, 4, 256>}, {transform_indices = @transform_3, window_bounds = array<i64: 1, 1, 256>}]} {
    %c0 = arith.constant 0 : index
    %c0_0 = arith.constant 0 : index
    %c0_1 = arith.constant 0 : index
    %0 = vector.load %arg3[%c0, %c0_0, %c0_1] : memref<1x4x256xf32, #tpu.memory_space<vmem>>, vector<1x4x256xf32>
    %cst = arith.constant dense<0xFF800000> : vector<1x256xf32>
    %1 = vector.multi_reduction <maximumf>, %0, %cst [1] : vector<1x4x256xf32> to vector<1x256xf32>
    %cst_2 = arith.constant dense<0.000000e+00> : vector<1x256xf32>
    %2 = vector.multi_reduction <add>, %0, %cst_2 [1] : vector<1x4x256xf32> to vector<1x256xf32>
    %cst_3 = arith.constant 4.000000e+00 : f32
    %3 = vector.broadcast %cst_3 : f32 to vector<1x256xf32>
    %4 = arith.divf %2, %3 : vector<1x256xf32>
    %cst_4 = arith.constant 0.000000e+00 : f32
    %5 = vector.broadcast %cst_4 : f32 to vector<1x128xf32>
    %c0_5 = arith.constant 0 : index
    %c0_6 = arith.constant 0 : index
    %6 = vector.load %arg5[%c0_5, %c0_6] : memref<1x512xf32, #tpu.memory_space<vmem>>, vector<1x128xf32>
    tpu.vector_store %arg5[%c0_5, %c0_6], %5 {strides = array<i32>} : memref<1x512xf32, #tpu.memory_space<vmem>>, vector<1x128xf32>,
    %c0_7 = arith.constant 0 : index
    %c384 = arith.constant 384 : index
    %7 = vector.load %arg5[%c0_7, %c384] : memref<1x512xf32, #tpu.memory_space<vmem>>, vector<1x128xf32>
    tpu.vector_store %arg5[%c0_7, %c384], %5 {strides = array<i32>} : memref<1x512xf32, #tpu.memory_space<vmem>>, vector<1x128xf32>,
    %c0_8 = arith.constant 0 : index
    %c0_9 = arith.constant 0 : index
    %8 = vector.load %arg6[%c0_8, %c0_9] : memref<1x512xf32, #tpu.memory_space<vmem>>, vector<1x128xf32>
    tpu.vector_store %arg6[%c0_8, %c0_9], %5 {strides = array<i32>} : memref<1x512xf32, #tpu.memory_space<vmem>>, vector<1x128xf32>,
    %c0_10 = arith.constant 0 : index
    %c384_11 = arith.constant 384 : index
    %9 = vector.load %arg6[%c0_10, %c384_11] : memref<1x512xf32, #tpu.memory_space<vmem>>, vector<1x128xf32>
    tpu.vector_store %arg6[%c0_10, %c384_11], %5 {strides = array<i32>} : memref<1x512xf32, #tpu.memory_space<vmem>>, vector<1x128xf32>,
    %c0_12 = arith.constant 0 : index
    %c128 = arith.constant 128 : index
    %10 = vector.load %arg5[%c0_12, %c128] : memref<1x512xf32, #tpu.memory_space<vmem>>, vector<1x256xf32>
    tpu.vector_store %arg5[%c0_12, %c128], %1 {strides = array<i32>} : memref<1x512xf32, #tpu.memory_space<vmem>>, vector<1x256xf32>,
    %c0_13 = arith.constant 0 : index
    %c128_14 = arith.constant 128 : index
    %11 = vector.load %arg6[%c0_13, %c128_14] : memref<1x512xf32, #tpu.memory_space<vmem>>, vector<1x256xf32>
    tpu.vector_store %arg6[%c0_13, %c128_14], %4 {strides = array<i32>} : memref<1x512xf32, #tpu.memory_space<vmem>>, vector<1x256xf32>,
    %cst_15 = arith.constant 0.000000e+00 : f32
    %12 = vector.broadcast %cst_15 : f32 to vector<1x256xf32>
    %cst_16 = arith.constant 0.000000e+00 : f32
    %13 = vector.broadcast %cst_16 : f32 to vector<1x256xf32>
    %c0_17 = arith.constant 0 : index
    %14 = memref.load %arg1[%c0_17] : memref<98xf32, #tpu.memory_space<smem>>
    %c49 = arith.constant 49 : index
    %15 = memref.load %arg1[%c49] : memref<98xf32, #tpu.memory_space<smem>>
    %c0_18 = arith.constant 0 : index
    %c77 = arith.constant 77 : index
    %16 = vector.load %arg5[%c0_18, %c77] : memref<1x512xf32, #tpu.memory_space<vmem>>, vector<1x256xf32>
    %c0_19 = arith.constant 0 : index
    %c77_20 = arith.constant 77 : index
    %17 = vector.load %arg6[%c0_19, %c77_20] : memref<1x512xf32, #tpu.memory_space<vmem>>, vector<1x256xf32>
    %18 = vector.broadcast %14 : f32 to vector<1x256xf32>
    %19 = arith.mulf %18, %16 : vector<1x256xf32>
    %20 = arith.addf %13, %19 : vector<1x256xf32>
    %21 = vector.broadcast %15 : f32 to vector<1x256xf32>
    %22 = arith.mulf %21, %17 : vector<1x256xf32>
    %23 = arith.addf %20, %22 : vector<1x256xf32>
    %c7 = arith.constant 7 : index
    %24 = memref.load %arg1[%c7] : memref<98xf32, #tpu.memory_space<smem>>
    %c56 = arith.constant 56 : index
    %25 = memref.load %arg1[%c56] : memref<98xf32, #tpu.memory_space<smem>>
    %c0_21 = arith.constant 0 : index
    %c93 = arith.constant 93 : index
    %26 = vector.load %arg5[%c0_21, %c93] : memref<1x512xf32, #tpu.memory_space<vmem>>, vector<1x256xf32>
    %c0_22 = arith.constant 0 : index
    %c93_23 = arith.constant 93 : index
    %27 = vector.load %arg6[%c0_22, %c93_23] : memref<1x512xf32, #tpu.memory_space<vmem>>, vector<1x256xf32>
    %28 = vector.broadcast %24 : f32 to vector<1x256xf32>
    %29 = arith.mulf %28, %26 : vector<1x256xf32>
    %30 = arith.addf %23, %29 : vector<1x256xf32>
    %31 = vector.broadcast %25 : f32 to vector<1x256xf32>
    %32 = arith.mulf %31, %27 : vector<1x256xf32>
    %33 = arith.addf %30, %32 : vector<1x256xf32>
    %c14 = arith.constant 14 : index
    %34 = memref.load %arg1[%c14] : memref<98xf32, #tpu.memory_space<smem>>
    %c63 = arith.constant 63 : index
    %35 = memref.load %arg1[%c63] : memref<98xf32, #tpu.memory_space<smem>>
    %c0_24 = arith.constant 0 : index
    %c109 = arith.constant 109 : index
    %36 = vector.load %arg5[%c0_24, %c109] : memref<1x512xf32, #tpu.memory_space<vmem>>, vector<1x256xf32>
    %c0_25 = arith.constant 0 : index
    %c109_26 = arith.constant 109 : index
    %37 = vector.load %arg6[%c0_25, %c109_26] : memref<1x512xf32, #tpu.memory_space<vmem>>, vector<1x256xf32>
    %38 = vector.broadcast %34 : f32 to vector<1x256xf32>
    %39 = arith.mulf %38, %36 : vector<1x256xf32>
    %40 = arith.addf %33, %39 : vector<1x256xf32>
    %41 = vector.broadcast %35 : f32 to vector<1x256xf32>
    %42 = arith.mulf %41, %37 : vector<1x256xf32>
    %43 = arith.addf %40, %42 : vector<1x256xf32>
    %c21 = arith.constant 21 : index
    %44 = memref.load %arg1[%c21] : memref<98xf32, #tpu.memory_space<smem>>
    %c70 = arith.constant 70 : index
    %45 = memref.load %arg1[%c70] : memref<98xf32, #tpu.memory_space<smem>>
    %c0_27 = arith.constant 0 : index
    %c125 = arith.constant 125 : index
    %46 = vector.load %arg5[%c0_27, %c125] : memref<1x512xf32, #tpu.memory_space<vmem>>, vector<1x256xf32>
    %c0_28 = arith.constant 0 : index
    %c125_29 = arith.constant 125 : index
    %47 = vector.load %arg6[%c0_28, %c125_29] : memref<1x512xf32, #tpu.memory_space<vmem>>, vector<1x256xf32>
    %48 = vector.broadcast %44 : f32 to vector<1x256xf32>
    %49 = arith.mulf %48, %46 : vector<1x256xf32>
    %50 = arith.addf %43, %49 : vector<1x256xf32>
    %51 = vector.broadcast %45 : f32 to vector<1x256xf32>
    %52 = arith.mulf %51, %47 : vector<1x256xf32>
    %53 = arith.addf %50, %52 : vector<1x256xf32>
    %c28 = arith.constant 28 : index
    %54 = memref.load %arg1[%c28] : memref<98xf32, #tpu.memory_space<smem>>
    %c77_30 = arith.constant 77 : index
    %55 = memref.load %arg1[%c77_30] : memref<98xf32, #tpu.memory_space<smem>>
    %c0_31 = arith.constant 0 : index
    %c141 = arith.constant 141 : index
    %56 = vector.load %arg5[%c0_31, %c141] : memref<1x512xf32, #tpu.memory_space<vmem>>, vector<1x256xf32>
    %c0_32 = arith.constant 0 : index
    %c141_33 = arith.constant 141 : index
    %57 = vector.load %arg6[%c0_32, %c141_33] : memref<1x512xf32, #tpu.memory_space<vmem>>, vector<1x256xf32>
    %58 = vector.broadcast %54 : f32 to vector<1x256xf32>
    %59 = arith.mulf %58, %56 : vector<1x256xf32>
    %60 = arith.addf %53, %59 : vector<1x256xf32>
    %61 = vector.broadcast %55 : f32 to vector<1x256xf32>
    %62 = arith.mulf %61, %57 : vector<1x256xf32>
    %63 = arith.addf %60, %62 : vector<1x256xf32>
    %c35 = arith.constant 35 : index
    %64 = memref.load %arg1[%c35] : memref<98xf32, #tpu.memory_space<smem>>
    %c84 = arith.constant 84 : index
    %65 = memref.load %arg1[%c84] : memref<98xf32, #tpu.memory_space<smem>>
    %c0_34 = arith.constant 0 : index
    %c157 = arith.constant 157 : index
    %66 = vector.load %arg5[%c0_34, %c157] : memref<1x512xf32, #tpu.memory_space<vmem>>, vector<1x256xf32>
    %c0_35 = arith.constant 0 : index
    %c157_36 = arith.constant 157 : index
    %67 = vector.load %arg6[%c0_35, %c157_36] : memref<1x512xf32, #tpu.memory_space<vmem>>, vector<1x256xf32>
    %68 = vector.broadcast %64 : f32 to vector<1x256xf32>
    %69 = arith.mulf %68, %66 : vector<1x256xf32>
    %70 = arith.addf %63, %69 : vector<1x256xf32>
    %71 = vector.broadcast %65 : f32 to vector<1x256xf32>
    %72 = arith.mulf %71, %67 : vector<1x256xf32>
    %73 = arith.addf %70, %72 : vector<1x256xf32>
    %c42 = arith.constant 42 : index
    %74 = memref.load %arg1[%c42] : memref<98xf32, #tpu.memory_space<smem>>
    %c91 = arith.constant 91 : index
    %75 = memref.load %arg1[%c91] : memref<98xf32, #tpu.memory_space<smem>>
    %c0_37 = arith.constant 0 : index
    %c173 = arith.constant 173 : index
    %76 = vector.load %arg5[%c0_37, %c173] : memref<1x512xf32, #tpu.memory_space<vmem>>, vector<1x256xf32>
    %c0_38 = arith.constant 0 : index
    %c173_39 = arith.constant 173 : index
    %77 = vector.load %arg6[%c0_38, %c173_39] : memref<1x512xf32, #tpu.memory_space<vmem>>, vector<1x256xf32>
    %78 = vector.broadcast %74 : f32 to vector<1x256xf32>
    %79 = arith.mulf %78, %76 : vector<1x256xf32>
    %80 = arith.addf %73, %79 : vector<1x256xf32>
    %81 = vector.broadcast %75 : f32 to vector<1x256xf32>
    %82 = arith.mulf %81, %77 : vector<1x256xf32>
    %83 = arith.addf %80, %82 : vector<1x256xf32>
    %c0_40 = arith.constant 0 : index
    %c0_41 = arith.constant 0 : index
    %84 = vector.load %arg2[%c0_40, %c0_41] : memref<7x256xf32, #tpu.memory_space<vmem>>, vector<1x256xf32>
    %85 = arith.mulf %84, %83 : vector<1x256xf32>
    %86 = arith.addf %12, %85 : vector<1x256xf32>
    %cst_42 = arith.constant 0.000000e+00 : f32
    %87 = vector.broadcast %cst_42 : f32 to vector<1x256xf32>
    %c1 = arith.constant 1 : index
    %88 = memref.load %arg1[%c1] : memref<98xf32, #tpu.memory_space<smem>>
    %c50 = arith.constant 50 : index
    %89 = memref.load %arg1[%c50] : memref<98xf32, #tpu.memory_space<smem>>
    %c0_43 = arith.constant 0 : index
    %c78 = arith.constant 78 : index
    %90 = vector.load %arg5[%c0_43, %c78] : memref<1x512xf32, #tpu.memory_space<vmem>>, vector<1x256xf32>
    %c0_44 = arith.constant 0 : index
    %c78_45 = arith.constant 78 : index
    %91 = vector.load %arg6[%c0_44, %c78_45] : memref<1x512xf32, #tpu.memory_space<vmem>>, vector<1x256xf32>
    %92 = vector.broadcast %88 : f32 to vector<1x256xf32>
    %93 = arith.mulf %92, %90 : vector<1x256xf32>
    %94 = arith.addf %87, %93 : vector<1x256xf32>
    %95 = vector.broadcast %89 : f32 to vector<1x256xf32>
    %96 = arith.mulf %95, %91 : vector<1x256xf32>
    %97 = arith.addf %94, %96 : vector<1x256xf32>
    %c8 = arith.constant 8 : index
    %98 = memref.load %arg1[%c8] : memref<98xf32, #tpu.memory_space<smem>>
    %c57 = arith.constant 57 : index
    %99 = memref.load %arg1[%c57] : memref<98xf32, #tpu.memory_space<smem>>
    %c0_46 = arith.constant 0 : index
    %c94 = arith.constant 94 : index
    %100 = vector.load %arg5[%c0_46, %c94] : memref<1x512xf32, #tpu.memory_space<vmem>>, vector<1x256xf32>
    %c0_47 = arith.constant 0 : index
    %c94_48 = arith.constant 94 : index
    %101 = vector.load %arg6[%c0_47, %c94_48] : memref<1x512xf32, #tpu.memory_space<vmem>>, vector<1x256xf32>
    %102 = vector.broadcast %98 : f32 to vector<1x256xf32>
    %103 = arith.mulf %102, %100 : vector<1x256xf32>
    %104 = arith.addf %97, %103 : vector<1x256xf32>
    %105 = vector.broadcast %99 : f32 to vector<1x256xf32>
    %106 = arith.mulf %105, %101 : vector<1x256xf32>
    %107 = arith.addf %104, %106 : vector<1x256xf32>
    %c15 = arith.constant 15 : index
    %108 = memref.load %arg1[%c15] : memref<98xf32, #tpu.memory_space<smem>>
    %c64 = arith.constant 64 : index
    %109 = memref.load %arg1[%c64] : memref<98xf32, #tpu.memory_space<smem>>
    %c0_49 = arith.constant 0 : index
    %c110 = arith.constant 110 : index
    %110 = vector.load %arg5[%c0_49, %c110] : memref<1x512xf32, #tpu.memory_space<vmem>>, vector<1x256xf32>
    %c0_50 = arith.constant 0 : index
    %c110_51 = arith.constant 110 : index
    %111 = vector.load %arg6[%c0_50, %c110_51] : memref<1x512xf32, #tpu.memory_space<vmem>>, vector<1x256xf32>
    %112 = vector.broadcast %108 : f32 to vector<1x256xf32>
    %113 = arith.mulf %112, %110 : vector<1x256xf32>
    %114 = arith.addf %107, %113 : vector<1x256xf32>
    %115 = vector.broadcast %109 : f32 to vector<1x256xf32>
    %116 = arith.mulf %115, %111 : vector<1x256xf32>
    %117 = arith.addf %114, %116 : vector<1x256xf32>
    %c22 = arith.constant 22 : index
    %118 = memref.load %arg1[%c22] : memref<98xf32, #tpu.memory_space<smem>>
    %c71 = arith.constant 71 : index
    %119 = memref.load %arg1[%c71] : memref<98xf32, #tpu.memory_space<smem>>
    %c0_52 = arith.constant 0 : index
    %c126 = arith.constant 126 : index
    %120 = vector.load %arg5[%c0_52, %c126] : memref<1x512xf32, #tpu.memory_space<vmem>>, vector<1x256xf32>
    %c0_53 = arith.constant 0 : index
    %c126_54 = arith.constant 126 : index
    %121 = vector.load %arg6[%c0_53, %c126_54] : memref<1x512xf32, #tpu.memory_space<vmem>>, vector<1x256xf32>
    %122 = vector.broadcast %118 : f32 to vector<1x256xf32>
    %123 = arith.mulf %122, %120 : vector<1x256xf32>
    %124 = arith.addf %117, %123 : vector<1x256xf32>
    %125 = vector.broadcast %119 : f32 to vector<1x256xf32>
    %126 = arith.mulf %125, %121 : vector<1x256xf32>
    %127 = arith.addf %124, %126 : vector<1x256xf32>
    %c29 = arith.constant 29 : index
    %128 = memref.load %arg1[%c29] : memref<98xf32, #tpu.memory_space<smem>>
    %c78_55 = arith.constant 78 : index
    %129 = memref.load %arg1[%c78_55] : memref<98xf32, #tpu.memory_space<smem>>
    %c0_56 = arith.constant 0 : index
    %c142 = arith.constant 142 : index
    %130 = vector.load %arg5[%c0_56, %c142] : memref<1x512xf32, #tpu.memory_space<vmem>>, vector<1x256xf32>
    %c0_57 = arith.constant 0 : index
    %c142_58 = arith.constant 142 : index
    %131 = vector.load %arg6[%c0_57, %c142_58] : memref<1x512xf32, #tpu.memory_space<vmem>>, vector<1x256xf32>
    %132 = vector.broadcast %128 : f32 to vector<1x256xf32>
    %133 = arith.mulf %132, %130 : vector<1x256xf32>
    %134 = arith.addf %127, %133 : vector<1x256xf32>
    %135 = vector.broadcast %129 : f32 to vector<1x256xf32>
    %136 = arith.mulf %135, %131 : vector<1x256xf32>
    %137 = arith.addf %134, %136 : vector<1x256xf32>
    %c36 = arith.constant 36 : index
    %138 = memref.load %arg1[%c36] : memref<98xf32, #tpu.memory_space<smem>>
    %c85 = arith.constant 85 : index
    %139 = memref.load %arg1[%c85] : memref<98xf32, #tpu.memory_space<smem>>
    %c0_59 = arith.constant 0 : index
    %c158 = arith.constant 158 : index
    %140 = vector.load %arg5[%c0_59, %c158] : memref<1x512xf32, #tpu.memory_space<vmem>>, vector<1x256xf32>
    %c0_60 = arith.constant 0 : index
    %c158_61 = arith.constant 158 : index
    %141 = vector.load %arg6[%c0_60, %c158_61] : memref<1x512xf32, #tpu.memory_space<vmem>>, vector<1x256xf32>
    %142 = vector.broadcast %138 : f32 to vector<1x256xf32>
    %143 = arith.mulf %142, %140 : vector<1x256xf32>
    %144 = arith.addf %137, %143 : vector<1x256xf32>
    %145 = vector.broadcast %139 : f32 to vector<1x256xf32>
    %146 = arith.mulf %145, %141 : vector<1x256xf32>
    %147 = arith.addf %144, %146 : vector<1x256xf32>
    %c43 = arith.constant 43 : index
    %148 = memref.load %arg1[%c43] : memref<98xf32, #tpu.memory_space<smem>>
    %c92 = arith.constant 92 : index
    %149 = memref.load %arg1[%c92] : memref<98xf32, #tpu.memory_space<smem>>
    %c0_62 = arith.constant 0 : index
    %c174 = arith.constant 174 : index
    %150 = vector.load %arg5[%c0_62, %c174] : memref<1x512xf32, #tpu.memory_space<vmem>>, vector<1x256xf32>
    %c0_63 = arith.constant 0 : index
    %c174_64 = arith.constant 174 : index
    %151 = vector.load %arg6[%c0_63, %c174_64] : memref<1x512xf32, #tpu.memory_space<vmem>>, vector<1x256xf32>
    %152 = vector.broadcast %148 : f32 to vector<1x256xf32>
    %153 = arith.mulf %152, %150 : vector<1x256xf32>
    %154 = arith.addf %147, %153 : vector<1x256xf32>
    %155 = vector.broadcast %149 : f32 to vector<1x256xf32>
    %156 = arith.mulf %155, %151 : vector<1x256xf32>
    %157 = arith.addf %154, %156 : vector<1x256xf32>
    %c1_65 = arith.constant 1 : index
    %c0_66 = arith.constant 0 : index
    %158 = vector.load %arg2[%c1_65, %c0_66] : memref<7x256xf32, #tpu.memory_space<vmem>>, vector<1x256xf32>
    %159 = arith.mulf %158, %157 : vector<1x256xf32>
    %160 = arith.addf %86, %159 : vector<1x256xf32>
    %cst_67 = arith.constant 0.000000e+00 : f32
    %161 = vector.broadcast %cst_67 : f32 to vector<1x256xf32>
    %c2 = arith.constant 2 : index
    %162 = memref.load %arg1[%c2] : memref<98xf32, #tpu.memory_space<smem>>
    %c51 = arith.constant 51 : index
    %163 = memref.load %arg1[%c51] : memref<98xf32, #tpu.memory_space<smem>>
    %c0_68 = arith.constant 0 : index
    %c79 = arith.constant 79 : index
    %164 = vector.load %arg5[%c0_68, %c79] : memref<1x512xf32, #tpu.memory_space<vmem>>, vector<1x256xf32>
    %c0_69 = arith.constant 0 : index
    %c79_70 = arith.constant 79 : index
    %165 = vector.load %arg6[%c0_69, %c79_70] : memref<1x512xf32, #tpu.memory_space<vmem>>, vector<1x256xf32>
    %166 = vector.broadcast %162 : f32 to vector<1x256xf32>
    %167 = arith.mulf %166, %164 : vector<1x256xf32>
    %168 = arith.addf %161, %167 : vector<1x256xf32>
    %169 = vector.broadcast %163 : f32 to vector<1x256xf32>
    %170 = arith.mulf %169, %165 : vector<1x256xf32>
    %171 = arith.addf %168, %170 : vector<1x256xf32>
    %c9 = arith.constant 9 : index
    %172 = memref.load %arg1[%c9] : memref<98xf32, #tpu.memory_space<smem>>
    %c58 = arith.constant 58 : index
    %173 = memref.load %arg1[%c58] : memref<98xf32, #tpu.memory_space<smem>>
    %c0_71 = arith.constant 0 : index
    %c95 = arith.constant 95 : index
    %174 = vector.load %arg5[%c0_71, %c95] : memref<1x512xf32, #tpu.memory_space<vmem>>, vector<1x256xf32>
    %c0_72 = arith.constant 0 : index
    %c95_73 = arith.constant 95 : index
    %175 = vector.load %arg6[%c0_72, %c95_73] : memref<1x512xf32, #tpu.memory_space<vmem>>, vector<1x256xf32>
    %176 = vector.broadcast %172 : f32 to vector<1x256xf32>
    %177 = arith.mulf %176, %174 : vector<1x256xf32>
    %178 = arith.addf %171, %177 : vector<1x256xf32>
    %179 = vector.broadcast %173 : f32 to vector<1x256xf32>
    %180 = arith.mulf %179, %175 : vector<1x256xf32>
    %181 = arith.addf %178, %180 : vector<1x256xf32>
    %c16 = arith.constant 16 : index
    %182 = memref.load %arg1[%c16] : memref<98xf32, #tpu.memory_space<smem>>
    %c65 = arith.constant 65 : index
    %183 = memref.load %arg1[%c65] : memref<98xf32, #tpu.memory_space<smem>>
    %c0_74 = arith.constant 0 : index
    %c111 = arith.constant 111 : index
    %184 = vector.load %arg5[%c0_74, %c111] : memref<1x512xf32, #tpu.memory_space<vmem>>, vector<1x256xf32>
    %c0_75 = arith.constant 0 : index
    %c111_76 = arith.constant 111 : index
    %185 = vector.load %arg6[%c0_75, %c111_76] : memref<1x512xf32, #tpu.memory_space<vmem>>, vector<1x256xf32>
    %186 = vector.broadcast %182 : f32 to vector<1x256xf32>
    %187 = arith.mulf %186, %184 : vector<1x256xf32>
    %188 = arith.addf %181, %187 : vector<1x256xf32>
    %189 = vector.broadcast %183 : f32 to vector<1x256xf32>
    %190 = arith.mulf %189, %185 : vector<1x256xf32>
    %191 = arith.addf %188, %190 : vector<1x256xf32>
    %c23 = arith.constant 23 : index
    %192 = memref.load %arg1[%c23] : memref<98xf32, #tpu.memory_space<smem>>
    %c72 = arith.constant 72 : index
    %193 = memref.load %arg1[%c72] : memref<98xf32, #tpu.memory_space<smem>>
    %c0_77 = arith.constant 0 : index
    %c127 = arith.constant 127 : index
    %194 = vector.load %arg5[%c0_77, %c127] : memref<1x512xf32, #tpu.memory_space<vmem>>, vector<1x256xf32>
    %c0_78 = arith.constant 0 : index
    %c127_79 = arith.constant 127 : index
    %195 = vector.load %arg6[%c0_78, %c127_79] : memref<1x512xf32, #tpu.memory_space<vmem>>, vector<1x256xf32>
    %196 = vector.broadcast %192 : f32 to vector<1x256xf32>
    %197 = arith.mulf %196, %194 : vector<1x256xf32>
    %198 = arith.addf %191, %197 : vector<1x256xf32>
    %199 = vector.broadcast %193 : f32 to vector<1x256xf32>
    %200 = arith.mulf %199, %195 : vector<1x256xf32>
    %201 = arith.addf %198, %200 : vector<1x256xf32>
    %c30 = arith.constant 30 : index
    %202 = memref.load %arg1[%c30] : memref<98xf32, #tpu.memory_space<smem>>
    %c79_80 = arith.constant 79 : index
    %203 = memref.load %arg1[%c79_80] : memref<98xf32, #tpu.memory_space<smem>>
    %c0_81 = arith.constant 0 : index
    %c143 = arith.constant 143 : index
    %204 = vector.load %arg5[%c0_81, %c143] : memref<1x512xf32, #tpu.memory_space<vmem>>, vector<1x256xf32>
    %c0_82 = arith.constant 0 : index
    %c143_83 = arith.constant 143 : index
    %205 = vector.load %arg6[%c0_82, %c143_83] : memref<1x512xf32, #tpu.memory_space<vmem>>, vector<1x256xf32>
    %206 = vector.broadcast %202 : f32 to vector<1x256xf32>
    %207 = arith.mulf %206, %204 : vector<1x256xf32>
    %208 = arith.addf %201, %207 : vector<1x256xf32>
    %209 = vector.broadcast %203 : f32 to vector<1x256xf32>
    %210 = arith.mulf %209, %205 : vector<1x256xf32>
    %211 = arith.addf %208, %210 : vector<1x256xf32>
    %c37 = arith.constant 37 : index
    %212 = memref.load %arg1[%c37] : memref<98xf32, #tpu.memory_space<smem>>
    %c86 = arith.constant 86 : index
    %213 = memref.load %arg1[%c86] : memref<98xf32, #tpu.memory_space<smem>>
    %c0_84 = arith.constant 0 : index
    %c159 = arith.constant 159 : index
    %214 = vector.load %arg5[%c0_84, %c159] : memref<1x512xf32, #tpu.memory_space<vmem>>, vector<1x256xf32>
    %c0_85 = arith.constant 0 : index
    %c159_86 = arith.constant 159 : index
    %215 = vector.load %arg6[%c0_85, %c159_86] : memref<1x512xf32, #tpu.memory_space<vmem>>, vector<1x256xf32>
    %216 = vector.broadcast %212 : f32 to vector<1x256xf32>
    %217 = arith.mulf %216, %214 : vector<1x256xf32>
    %218 = arith.addf %211, %217 : vector<1x256xf32>
    %219 = vector.broadcast %213 : f32 to vector<1x256xf32>
    %220 = arith.mulf %219, %215 : vector<1x256xf32>
    %221 = arith.addf %218, %220 : vector<1x256xf32>
    %c44 = arith.constant 44 : index
    %222 = memref.load %arg1[%c44] : memref<98xf32, #tpu.memory_space<smem>>
    %c93_87 = arith.constant 93 : index
    %223 = memref.load %arg1[%c93_87] : memref<98xf32, #tpu.memory_space<smem>>
    %c0_88 = arith.constant 0 : index
    %c175 = arith.constant 175 : index
    %224 = vector.load %arg5[%c0_88, %c175] : memref<1x512xf32, #tpu.memory_space<vmem>>, vector<1x256xf32>
    %c0_89 = arith.constant 0 : index
    %c175_90 = arith.constant 175 : index
    %225 = vector.load %arg6[%c0_89, %c175_90] : memref<1x512xf32, #tpu.memory_space<vmem>>, vector<1x256xf32>
    %226 = vector.broadcast %222 : f32 to vector<1x256xf32>
    %227 = arith.mulf %226, %224 : vector<1x256xf32>
    %228 = arith.addf %221, %227 : vector<1x256xf32>
    %229 = vector.broadcast %223 : f32 to vector<1x256xf32>
    %230 = arith.mulf %229, %225 : vector<1x256xf32>
    %231 = arith.addf %228, %230 : vector<1x256xf32>
    %c2_91 = arith.constant 2 : index
    %c0_92 = arith.constant 0 : index
    %232 = vector.load %arg2[%c2_91, %c0_92] : memref<7x256xf32, #tpu.memory_space<vmem>>, vector<1x256xf32>
    %233 = arith.mulf %232, %231 : vector<1x256xf32>
    %234 = arith.addf %160, %233 : vector<1x256xf32>
    %cst_93 = arith.constant 0.000000e+00 : f32
    %235 = vector.broadcast %cst_93 : f32 to vector<1x256xf32>
    %c3 = arith.constant 3 : index
    %236 = memref.load %arg1[%c3] : memref<98xf32, #tpu.memory_space<smem>>
    %c52 = arith.constant 52 : index
    %237 = memref.load %arg1[%c52] : memref<98xf32, #tpu.memory_space<smem>>
    %c0_94 = arith.constant 0 : index
    %c80 = arith.constant 80 : index
    %238 = vector.load %arg5[%c0_94, %c80] : memref<1x512xf32, #tpu.memory_space<vmem>>, vector<1x256xf32>
    %c0_95 = arith.constant 0 : index
    %c80_96 = arith.constant 80 : index
    %239 = vector.load %arg6[%c0_95, %c80_96] : memref<1x512xf32, #tpu.memory_space<vmem>>, vector<1x256xf32>
    %240 = vector.broadcast %236 : f32 to vector<1x256xf32>
    %241 = arith.mulf %240, %238 : vector<1x256xf32>
    %242 = arith.addf %235, %241 : vector<1x256xf32>
    %243 = vector.broadcast %237 : f32 to vector<1x256xf32>
    %244 = arith.mulf %243, %239 : vector<1x256xf32>
    %245 = arith.addf %242, %244 : vector<1x256xf32>
    %c10 = arith.constant 10 : index
    %246 = memref.load %arg1[%c10] : memref<98xf32, #tpu.memory_space<smem>>
    %c59 = arith.constant 59 : index
    %247 = memref.load %arg1[%c59] : memref<98xf32, #tpu.memory_space<smem>>
    %c0_97 = arith.constant 0 : index
    %c96 = arith.constant 96 : index
    %248 = vector.load %arg5[%c0_97, %c96] : memref<1x512xf32, #tpu.memory_space<vmem>>, vector<1x256xf32>
    %c0_98 = arith.constant 0 : index
    %c96_99 = arith.constant 96 : index
    %249 = vector.load %arg6[%c0_98, %c96_99] : memref<1x512xf32, #tpu.memory_space<vmem>>, vector<1x256xf32>
    %250 = vector.broadcast %246 : f32 to vector<1x256xf32>
    %251 = arith.mulf %250, %248 : vector<1x256xf32>
    %252 = arith.addf %245, %251 : vector<1x256xf32>
    %253 = vector.broadcast %247 : f32 to vector<1x256xf32>
    %254 = arith.mulf %253, %249 : vector<1x256xf32>
    %255 = arith.addf %252, %254 : vector<1x256xf32>
    %c17 = arith.constant 17 : index
    %256 = memref.load %arg1[%c17] : memref<98xf32, #tpu.memory_space<smem>>
    %c66 = arith.constant 66 : index
    %257 = memref.load %arg1[%c66] : memref<98xf32, #tpu.memory_space<smem>>
    %c0_100 = arith.constant 0 : index
    %c112 = arith.constant 112 : index
    %258 = vector.load %arg5[%c0_100, %c112] : memref<1x512xf32, #tpu.memory_space<vmem>>, vector<1x256xf32>
    %c0_101 = arith.constant 0 : index
    %c112_102 = arith.constant 112 : index
    %259 = vector.load %arg6[%c0_101, %c112_102] : memref<1x512xf32, #tpu.memory_space<vmem>>, vector<1x256xf32>
    %260 = vector.broadcast %256 : f32 to vector<1x256xf32>
    %261 = arith.mulf %260, %258 : vector<1x256xf32>
    %262 = arith.addf %255, %261 : vector<1x256xf32>
    %263 = vector.broadcast %257 : f32 to vector<1x256xf32>
    %264 = arith.mulf %263, %259 : vector<1x256xf32>
    %265 = arith.addf %262, %264 : vector<1x256xf32>
    %c24 = arith.constant 24 : index
    %266 = memref.load %arg1[%c24] : memref<98xf32, #tpu.memory_space<smem>>
    %c73 = arith.constant 73 : index
    %267 = memref.load %arg1[%c73] : memref<98xf32, #tpu.memory_space<smem>>
    %c0_103 = arith.constant 0 : index
    %c128_104 = arith.constant 128 : index
    %268 = vector.load %arg5[%c0_103, %c128_104] : memref<1x512xf32, #tpu.memory_space<vmem>>, vector<1x256xf32>
    %c0_105 = arith.constant 0 : index
    %c128_106 = arith.constant 128 : index
    %269 = vector.load %arg6[%c0_105, %c128_106] : memref<1x512xf32, #tpu.memory_space<vmem>>, vector<1x256xf32>
    %270 = vector.broadcast %266 : f32 to vector<1x256xf32>
    %271 = arith.mulf %270, %268 : vector<1x256xf32>
    %272 = arith.addf %265, %271 : vector<1x256xf32>
    %273 = vector.broadcast %267 : f32 to vector<1x256xf32>
    %274 = arith.mulf %273, %269 : vector<1x256xf32>
    %275 = arith.addf %272, %274 : vector<1x256xf32>
    %c31 = arith.constant 31 : index
    %276 = memref.load %arg1[%c31] : memref<98xf32, #tpu.memory_space<smem>>
    %c80_107 = arith.constant 80 : index
    %277 = memref.load %arg1[%c80_107] : memref<98xf32, #tpu.memory_space<smem>>
    %c0_108 = arith.constant 0 : index
    %c144 = arith.constant 144 : index
    %278 = vector.load %arg5[%c0_108, %c144] : memref<1x512xf32, #tpu.memory_space<vmem>>, vector<1x256xf32>
    %c0_109 = arith.constant 0 : index
    %c144_110 = arith.constant 144 : index
    %279 = vector.load %arg6[%c0_109, %c144_110] : memref<1x512xf32, #tpu.memory_space<vmem>>, vector<1x256xf32>
    %280 = vector.broadcast %276 : f32 to vector<1x256xf32>
    %281 = arith.mulf %280, %278 : vector<1x256xf32>
    %282 = arith.addf %275, %281 : vector<1x256xf32>
    %283 = vector.broadcast %277 : f32 to vector<1x256xf32>
    %284 = arith.mulf %283, %279 : vector<1x256xf32>
    %285 = arith.addf %282, %284 : vector<1x256xf32>
    %c38 = arith.constant 38 : index
    %286 = memref.load %arg1[%c38] : memref<98xf32, #tpu.memory_space<smem>>
    %c87 = arith.constant 87 : index
    %287 = memref.load %arg1[%c87] : memref<98xf32, #tpu.memory_space<smem>>
    %c0_111 = arith.constant 0 : index
    %c160 = arith.constant 160 : index
    %288 = vector.load %arg5[%c0_111, %c160] : memref<1x512xf32, #tpu.memory_space<vmem>>, vector<1x256xf32>
    %c0_112 = arith.constant 0 : index
    %c160_113 = arith.constant 160 : index
    %289 = vector.load %arg6[%c0_112, %c160_113] : memref<1x512xf32, #tpu.memory_space<vmem>>, vector<1x256xf32>
    %290 = vector.broadcast %286 : f32 to vector<1x256xf32>
    %291 = arith.mulf %290, %288 : vector<1x256xf32>
    %292 = arith.addf %285, %291 : vector<1x256xf32>
    %293 = vector.broadcast %287 : f32 to vector<1x256xf32>
    %294 = arith.mulf %293, %289 : vector<1x256xf32>
    %295 = arith.addf %292, %294 : vector<1x256xf32>
    %c45 = arith.constant 45 : index
    %296 = memref.load %arg1[%c45] : memref<98xf32, #tpu.memory_space<smem>>
    %c94_114 = arith.constant 94 : index
    %297 = memref.load %arg1[%c94_114] : memref<98xf32, #tpu.memory_space<smem>>
    %c0_115 = arith.constant 0 : index
    %c176 = arith.constant 176 : index
    %298 = vector.load %arg5[%c0_115, %c176] : memref<1x512xf32, #tpu.memory_space<vmem>>, vector<1x256xf32>
    %c0_116 = arith.constant 0 : index
    %c176_117 = arith.constant 176 : index
    %299 = vector.load %arg6[%c0_116, %c176_117] : memref<1x512xf32, #tpu.memory_space<vmem>>, vector<1x256xf32>
    %300 = vector.broadcast %296 : f32 to vector<1x256xf32>
    %301 = arith.mulf %300, %298 : vector<1x256xf32>
    %302 = arith.addf %295, %301 : vector<1x256xf32>
    %303 = vector.broadcast %297 : f32 to vector<1x256xf32>
    %304 = arith.mulf %303, %299 : vector<1x256xf32>
    %305 = arith.addf %302, %304 : vector<1x256xf32>
    %c3_118 = arith.constant 3 : index
    %c0_119 = arith.constant 0 : index
    %306 = vector.load %arg2[%c3_118, %c0_119] : memref<7x256xf32, #tpu.memory_space<vmem>>, vector<1x256xf32>
    %307 = arith.mulf %306, %305 : vector<1x256xf32>
    %308 = arith.addf %234, %307 : vector<1x256xf32>
    %cst_120 = arith.constant 0.000000e+00 : f32
    %309 = vector.broadcast %cst_120 : f32 to vector<1x256xf32>
    %c4 = arith.constant 4 : index
    %310 = memref.load %arg1[%c4] : memref<98xf32, #tpu.memory_space<smem>>
    %c53 = arith.constant 53 : index
    %311 = memref.load %arg1[%c53] : memref<98xf32, #tpu.memory_space<smem>>
    %c0_121 = arith.constant 0 : index
    %c81 = arith.constant 81 : index
    %312 = vector.load %arg5[%c0_121, %c81] : memref<1x512xf32, #tpu.memory_space<vmem>>, vector<1x256xf32>
    %c0_122 = arith.constant 0 : index
    %c81_123 = arith.constant 81 : index
    %313 = vector.load %arg6[%c0_122, %c81_123] : memref<1x512xf32, #tpu.memory_space<vmem>>, vector<1x256xf32>
    %314 = vector.broadcast %310 : f32 to vector<1x256xf32>
    %315 = arith.mulf %314, %312 : vector<1x256xf32>
    %316 = arith.addf %309, %315 : vector<1x256xf32>
    %317 = vector.broadcast %311 : f32 to vector<1x256xf32>
    %318 = arith.mulf %317, %313 : vector<1x256xf32>
    %319 = arith.addf %316, %318 : vector<1x256xf32>
    %c11 = arith.constant 11 : index
    %320 = memref.load %arg1[%c11] : memref<98xf32, #tpu.memory_space<smem>>
    %c60 = arith.constant 60 : index
    %321 = memref.load %arg1[%c60] : memref<98xf32, #tpu.memory_space<smem>>
    %c0_124 = arith.constant 0 : index
    %c97 = arith.constant 97 : index
    %322 = vector.load %arg5[%c0_124, %c97] : memref<1x512xf32, #tpu.memory_space<vmem>>, vector<1x256xf32>
    %c0_125 = arith.constant 0 : index
    %c97_126 = arith.constant 97 : index
    %323 = vector.load %arg6[%c0_125, %c97_126] : memref<1x512xf32, #tpu.memory_space<vmem>>, vector<1x256xf32>
    %324 = vector.broadcast %320 : f32 to vector<1x256xf32>
    %325 = arith.mulf %324, %322 : vector<1x256xf32>
    %326 = arith.addf %319, %325 : vector<1x256xf32>
    %327 = vector.broadcast %321 : f32 to vector<1x256xf32>
    %328 = arith.mulf %327, %323 : vector<1x256xf32>
    %329 = arith.addf %326, %328 : vector<1x256xf32>
    %c18 = arith.constant 18 : index
    %330 = memref.load %arg1[%c18] : memref<98xf32, #tpu.memory_space<smem>>
    %c67 = arith.constant 67 : index
    %331 = memref.load %arg1[%c67] : memref<98xf32, #tpu.memory_space<smem>>
    %c0_127 = arith.constant 0 : index
    %c113 = arith.constant 113 : index
    %332 = vector.load %arg5[%c0_127, %c113] : memref<1x512xf32, #tpu.memory_space<vmem>>, vector<1x256xf32>
    %c0_128 = arith.constant 0 : index
    %c113_129 = arith.constant 113 : index
    %333 = vector.load %arg6[%c0_128, %c113_129] : memref<1x512xf32, #tpu.memory_space<vmem>>, vector<1x256xf32>
    %334 = vector.broadcast %330 : f32 to vector<1x256xf32>
    %335 = arith.mulf %334, %332 : vector<1x256xf32>
    %336 = arith.addf %329, %335 : vector<1x256xf32>
    %337 = vector.broadcast %331 : f32 to vector<1x256xf32>
    %338 = arith.mulf %337, %333 : vector<1x256xf32>
    %339 = arith.addf %336, %338 : vector<1x256xf32>
    %c25 = arith.constant 25 : index
    %340 = memref.load %arg1[%c25] : memref<98xf32, #tpu.memory_space<smem>>
    %c74 = arith.constant 74 : index
    %341 = memref.load %arg1[%c74] : memref<98xf32, #tpu.memory_space<smem>>
    %c0_130 = arith.constant 0 : index
    %c129 = arith.constant 129 : index
    %342 = vector.load %arg5[%c0_130, %c129] : memref<1x512xf32, #tpu.memory_space<vmem>>, vector<1x256xf32>
    %c0_131 = arith.constant 0 : index
    %c129_132 = arith.constant 129 : index
    %343 = vector.load %arg6[%c0_131, %c129_132] : memref<1x512xf32, #tpu.memory_space<vmem>>, vector<1x256xf32>
    %344 = vector.broadcast %340 : f32 to vector<1x256xf32>
    %345 = arith.mulf %344, %342 : vector<1x256xf32>
    %346 = arith.addf %339, %345 : vector<1x256xf32>
    %347 = vector.broadcast %341 : f32 to vector<1x256xf32>
    %348 = arith.mulf %347, %343 : vector<1x256xf32>
    %349 = arith.addf %346, %348 : vector<1x256xf32>
    %c32 = arith.constant 32 : index
    %350 = memref.load %arg1[%c32] : memref<98xf32, #tpu.memory_space<smem>>
    %c81_133 = arith.constant 81 : index
    %351 = memref.load %arg1[%c81_133] : memref<98xf32, #tpu.memory_space<smem>>
    %c0_134 = arith.constant 0 : index
    %c145 = arith.constant 145 : index
    %352 = vector.load %arg5[%c0_134, %c145] : memref<1x512xf32, #tpu.memory_space<vmem>>, vector<1x256xf32>
    %c0_135 = arith.constant 0 : index
    %c145_136 = arith.constant 145 : index
    %353 = vector.load %arg6[%c0_135, %c145_136] : memref<1x512xf32, #tpu.memory_space<vmem>>, vector<1x256xf32>
    %354 = vector.broadcast %350 : f32 to vector<1x256xf32>
    %355 = arith.mulf %354, %352 : vector<1x256xf32>
    %356 = arith.addf %349, %355 : vector<1x256xf32>
    %357 = vector.broadcast %351 : f32 to vector<1x256xf32>
    %358 = arith.mulf %357, %353 : vector<1x256xf32>
    %359 = arith.addf %356, %358 : vector<1x256xf32>
    %c39 = arith.constant 39 : index
    %360 = memref.load %arg1[%c39] : memref<98xf32, #tpu.memory_space<smem>>
    %c88 = arith.constant 88 : index
    %361 = memref.load %arg1[%c88] : memref<98xf32, #tpu.memory_space<smem>>
    %c0_137 = arith.constant 0 : index
    %c161 = arith.constant 161 : index
    %362 = vector.load %arg5[%c0_137, %c161] : memref<1x512xf32, #tpu.memory_space<vmem>>, vector<1x256xf32>
    %c0_138 = arith.constant 0 : index
    %c161_139 = arith.constant 161 : index
    %363 = vector.load %arg6[%c0_138, %c161_139] : memref<1x512xf32, #tpu.memory_space<vmem>>, vector<1x256xf32>
    %364 = vector.broadcast %360 : f32 to vector<1x256xf32>
    %365 = arith.mulf %364, %362 : vector<1x256xf32>
    %366 = arith.addf %359, %365 : vector<1x256xf32>
    %367 = vector.broadcast %361 : f32 to vector<1x256xf32>
    %368 = arith.mulf %367, %363 : vector<1x256xf32>
    %369 = arith.addf %366, %368 : vector<1x256xf32>
    %c46 = arith.constant 46 : index
    %370 = memref.load %arg1[%c46] : memref<98xf32, #tpu.memory_space<smem>>
    %c95_140 = arith.constant 95 : index
    %371 = memref.load %arg1[%c95_140] : memref<98xf32, #tpu.memory_space<smem>>
    %c0_141 = arith.constant 0 : index
    %c177 = arith.constant 177 : index
    %372 = vector.load %arg5[%c0_141, %c177] : memref<1x512xf32, #tpu.memory_space<vmem>>, vector<1x256xf32>
    %c0_142 = arith.constant 0 : index
    %c177_143 = arith.constant 177 : index
    %373 = vector.load %arg6[%c0_142, %c177_143] : memref<1x512xf32, #tpu.memory_space<vmem>>, vector<1x256xf32>
    %374 = vector.broadcast %370 : f32 to vector<1x256xf32>
    %375 = arith.mulf %374, %372 : vector<1x256xf32>
    %376 = arith.addf %369, %375 : vector<1x256xf32>
    %377 = vector.broadcast %371 : f32 to vector<1x256xf32>
    %378 = arith.mulf %377, %373 : vector<1x256xf32>
    %379 = arith.addf %376, %378 : vector<1x256xf32>
    %c4_144 = arith.constant 4 : index
    %c0_145 = arith.constant 0 : index
    %380 = vector.load %arg2[%c4_144, %c0_145] : memref<7x256xf32, #tpu.memory_space<vmem>>, vector<1x256xf32>
    %381 = arith.mulf %380, %379 : vector<1x256xf32>
    %382 = arith.addf %308, %381 : vector<1x256xf32>
    %cst_146 = arith.constant 0.000000e+00 : f32
    %383 = vector.broadcast %cst_146 : f32 to vector<1x256xf32>
    %c5 = arith.constant 5 : index
    %384 = memref.load %arg1[%c5] : memref<98xf32, #tpu.memory_space<smem>>
    %c54 = arith.constant 54 : index
    %385 = memref.load %arg1[%c54] : memref<98xf32, #tpu.memory_space<smem>>
    %c0_147 = arith.constant 0 : index
    %c82 = arith.constant 82 : index
    %386 = vector.load %arg5[%c0_147, %c82] : memref<1x512xf32, #tpu.memory_space<vmem>>, vector<1x256xf32>
    %c0_148 = arith.constant 0 : index
    %c82_149 = arith.constant 82 : index
    %387 = vector.load %arg6[%c0_148, %c82_149] : memref<1x512xf32, #tpu.memory_space<vmem>>, vector<1x256xf32>
    %388 = vector.broadcast %384 : f32 to vector<1x256xf32>
    %389 = arith.mulf %388, %386 : vector<1x256xf32>
    %390 = arith.addf %383, %389 : vector<1x256xf32>
    %391 = vector.broadcast %385 : f32 to vector<1x256xf32>
    %392 = arith.mulf %391, %387 : vector<1x256xf32>
    %393 = arith.addf %390, %392 : vector<1x256xf32>
    %c12 = arith.constant 12 : index
    %394 = memref.load %arg1[%c12] : memref<98xf32, #tpu.memory_space<smem>>
    %c61 = arith.constant 61 : index
    %395 = memref.load %arg1[%c61] : memref<98xf32, #tpu.memory_space<smem>>
    %c0_150 = arith.constant 0 : index
    %c98 = arith.constant 98 : index
    %396 = vector.load %arg5[%c0_150, %c98] : memref<1x512xf32, #tpu.memory_space<vmem>>, vector<1x256xf32>
    %c0_151 = arith.constant 0 : index
    %c98_152 = arith.constant 98 : index
    %397 = vector.load %arg6[%c0_151, %c98_152] : memref<1x512xf32, #tpu.memory_space<vmem>>, vector<1x256xf32>
    %398 = vector.broadcast %394 : f32 to vector<1x256xf32>
    %399 = arith.mulf %398, %396 : vector<1x256xf32>
    %400 = arith.addf %393, %399 : vector<1x256xf32>
    %401 = vector.broadcast %395 : f32 to vector<1x256xf32>
    %402 = arith.mulf %401, %397 : vector<1x256xf32>
    %403 = arith.addf %400, %402 : vector<1x256xf32>
    %c19 = arith.constant 19 : index
    %404 = memref.load %arg1[%c19] : memref<98xf32, #tpu.memory_space<smem>>
    %c68 = arith.constant 68 : index
    %405 = memref.load %arg1[%c68] : memref<98xf32, #tpu.memory_space<smem>>
    %c0_153 = arith.constant 0 : index
    %c114 = arith.constant 114 : index
    %406 = vector.load %arg5[%c0_153, %c114] : memref<1x512xf32, #tpu.memory_space<vmem>>, vector<1x256xf32>
    %c0_154 = arith.constant 0 : index
    %c114_155 = arith.constant 114 : index
    %407 = vector.load %arg6[%c0_154, %c114_155] : memref<1x512xf32, #tpu.memory_space<vmem>>, vector<1x256xf32>
    %408 = vector.broadcast %404 : f32 to vector<1x256xf32>
    %409 = arith.mulf %408, %406 : vector<1x256xf32>
    %410 = arith.addf %403, %409 : vector<1x256xf32>
    %411 = vector.broadcast %405 : f32 to vector<1x256xf32>
    %412 = arith.mulf %411, %407 : vector<1x256xf32>
    %413 = arith.addf %410, %412 : vector<1x256xf32>
    %c26 = arith.constant 26 : index
    %414 = memref.load %arg1[%c26] : memref<98xf32, #tpu.memory_space<smem>>
    %c75 = arith.constant 75 : index
    %415 = memref.load %arg1[%c75] : memref<98xf32, #tpu.memory_space<smem>>
    %c0_156 = arith.constant 0 : index
    %c130 = arith.constant 130 : index
    %416 = vector.load %arg5[%c0_156, %c130] : memref<1x512xf32, #tpu.memory_space<vmem>>, vector<1x256xf32>
    %c0_157 = arith.constant 0 : index
    %c130_158 = arith.constant 130 : index
    %417 = vector.load %arg6[%c0_157, %c130_158] : memref<1x512xf32, #tpu.memory_space<vmem>>, vector<1x256xf32>
    %418 = vector.broadcast %414 : f32 to vector<1x256xf32>
    %419 = arith.mulf %418, %416 : vector<1x256xf32>
    %420 = arith.addf %413, %419 : vector<1x256xf32>
    %421 = vector.broadcast %415 : f32 to vector<1x256xf32>
    %422 = arith.mulf %421, %417 : vector<1x256xf32>
    %423 = arith.addf %420, %422 : vector<1x256xf32>
    %c33 = arith.constant 33 : index
    %424 = memref.load %arg1[%c33] : memref<98xf32, #tpu.memory_space<smem>>
    %c82_159 = arith.constant 82 : index
    %425 = memref.load %arg1[%c82_159] : memref<98xf32, #tpu.memory_space<smem>>
    %c0_160 = arith.constant 0 : index
    %c146 = arith.constant 146 : index
    %426 = vector.load %arg5[%c0_160, %c146] : memref<1x512xf32, #tpu.memory_space<vmem>>, vector<1x256xf32>
    %c0_161 = arith.constant 0 : index
    %c146_162 = arith.constant 146 : index
    %427 = vector.load %arg6[%c0_161, %c146_162] : memref<1x512xf32, #tpu.memory_space<vmem>>, vector<1x256xf32>
    %428 = vector.broadcast %424 : f32 to vector<1x256xf32>
    %429 = arith.mulf %428, %426 : vector<1x256xf32>
    %430 = arith.addf %423, %429 : vector<1x256xf32>
    %431 = vector.broadcast %425 : f32 to vector<1x256xf32>
    %432 = arith.mulf %431, %427 : vector<1x256xf32>
    %433 = arith.addf %430, %432 : vector<1x256xf32>
    %c40 = arith.constant 40 : index
    %434 = memref.load %arg1[%c40] : memref<98xf32, #tpu.memory_space<smem>>
    %c89 = arith.constant 89 : index
    %435 = memref.load %arg1[%c89] : memref<98xf32, #tpu.memory_space<smem>>
    %c0_163 = arith.constant 0 : index
    %c162 = arith.constant 162 : index
    %436 = vector.load %arg5[%c0_163, %c162] : memref<1x512xf32, #tpu.memory_space<vmem>>, vector<1x256xf32>
    %c0_164 = arith.constant 0 : index
    %c162_165 = arith.constant 162 : index
    %437 = vector.load %arg6[%c0_164, %c162_165] : memref<1x512xf32, #tpu.memory_space<vmem>>, vector<1x256xf32>
    %438 = vector.broadcast %434 : f32 to vector<1x256xf32>
    %439 = arith.mulf %438, %436 : vector<1x256xf32>
    %440 = arith.addf %433, %439 : vector<1x256xf32>
    %441 = vector.broadcast %435 : f32 to vector<1x256xf32>
    %442 = arith.mulf %441, %437 : vector<1x256xf32>
    %443 = arith.addf %440, %442 : vector<1x256xf32>
    %c47 = arith.constant 47 : index
    %444 = memref.load %arg1[%c47] : memref<98xf32, #tpu.memory_space<smem>>
    %c96_166 = arith.constant 96 : index
    %445 = memref.load %arg1[%c96_166] : memref<98xf32, #tpu.memory_space<smem>>
    %c0_167 = arith.constant 0 : index
    %c178 = arith.constant 178 : index
    %446 = vector.load %arg5[%c0_167, %c178] : memref<1x512xf32, #tpu.memory_space<vmem>>, vector<1x256xf32>
    %c0_168 = arith.constant 0 : index
    %c178_169 = arith.constant 178 : index
    %447 = vector.load %arg6[%c0_168, %c178_169] : memref<1x512xf32, #tpu.memory_space<vmem>>, vector<1x256xf32>
    %448 = vector.broadcast %444 : f32 to vector<1x256xf32>
    %449 = arith.mulf %448, %446 : vector<1x256xf32>
    %450 = arith.addf %443, %449 : vector<1x256xf32>
    %451 = vector.broadcast %445 : f32 to vector<1x256xf32>
    %452 = arith.mulf %451, %447 : vector<1x256xf32>
    %453 = arith.addf %450, %452 : vector<1x256xf32>
    %c5_170 = arith.constant 5 : index
    %c0_171 = arith.constant 0 : index
    %454 = vector.load %arg2[%c5_170, %c0_171] : memref<7x256xf32, #tpu.memory_space<vmem>>, vector<1x256xf32>
    %455 = arith.mulf %454, %453 : vector<1x256xf32>
    %456 = arith.addf %382, %455 : vector<1x256xf32>
    %cst_172 = arith.constant 0.000000e+00 : f32
    %457 = vector.broadcast %cst_172 : f32 to vector<1x256xf32>
    %c6 = arith.constant 6 : index
    %458 = memref.load %arg1[%c6] : memref<98xf32, #tpu.memory_space<smem>>
    %c55 = arith.constant 55 : index
    %459 = memref.load %arg1[%c55] : memref<98xf32, #tpu.memory_space<smem>>
    %c0_173 = arith.constant 0 : index
    %c83 = arith.constant 83 : index
    %460 = vector.load %arg5[%c0_173, %c83] : memref<1x512xf32, #tpu.memory_space<vmem>>, vector<1x256xf32>
    %c0_174 = arith.constant 0 : index
    %c83_175 = arith.constant 83 : index
    %461 = vector.load %arg6[%c0_174, %c83_175] : memref<1x512xf32, #tpu.memory_space<vmem>>, vector<1x256xf32>
    %462 = vector.broadcast %458 : f32 to vector<1x256xf32>
    %463 = arith.mulf %462, %460 : vector<1x256xf32>
    %464 = arith.addf %457, %463 : vector<1x256xf32>
    %465 = vector.broadcast %459 : f32 to vector<1x256xf32>
    %466 = arith.mulf %465, %461 : vector<1x256xf32>
    %467 = arith.addf %464, %466 : vector<1x256xf32>
    %c13 = arith.constant 13 : index
    %468 = memref.load %arg1[%c13] : memref<98xf32, #tpu.memory_space<smem>>
    %c62 = arith.constant 62 : index
    %469 = memref.load %arg1[%c62] : memref<98xf32, #tpu.memory_space<smem>>
    %c0_176 = arith.constant 0 : index
    %c99 = arith.constant 99 : index
    %470 = vector.load %arg5[%c0_176, %c99] : memref<1x512xf32, #tpu.memory_space<vmem>>, vector<1x256xf32>
    %c0_177 = arith.constant 0 : index
    %c99_178 = arith.constant 99 : index
    %471 = vector.load %arg6[%c0_177, %c99_178] : memref<1x512xf32, #tpu.memory_space<vmem>>, vector<1x256xf32>
    %472 = vector.broadcast %468 : f32 to vector<1x256xf32>
    %473 = arith.mulf %472, %470 : vector<1x256xf32>
    %474 = arith.addf %467, %473 : vector<1x256xf32>
    %475 = vector.broadcast %469 : f32 to vector<1x256xf32>
    %476 = arith.mulf %475, %471 : vector<1x256xf32>
    %477 = arith.addf %474, %476 : vector<1x256xf32>
    %c20 = arith.constant 20 : index
    %478 = memref.load %arg1[%c20] : memref<98xf32, #tpu.memory_space<smem>>
    %c69 = arith.constant 69 : index
    %479 = memref.load %arg1[%c69] : memref<98xf32, #tpu.memory_space<smem>>
    %c0_179 = arith.constant 0 : index
    %c115 = arith.constant 115 : index
    %480 = vector.load %arg5[%c0_179, %c115] : memref<1x512xf32, #tpu.memory_space<vmem>>, vector<1x256xf32>
    %c0_180 = arith.constant 0 : index
    %c115_181 = arith.constant 115 : index
    %481 = vector.load %arg6[%c0_180, %c115_181] : memref<1x512xf32, #tpu.memory_space<vmem>>, vector<1x256xf32>
    %482 = vector.broadcast %478 : f32 to vector<1x256xf32>
    %483 = arith.mulf %482, %480 : vector<1x256xf32>
    %484 = arith.addf %477, %483 : vector<1x256xf32>
    %485 = vector.broadcast %479 : f32 to vector<1x256xf32>
    %486 = arith.mulf %485, %481 : vector<1x256xf32>
    %487 = arith.addf %484, %486 : vector<1x256xf32>
    %c27 = arith.constant 27 : index
    %488 = memref.load %arg1[%c27] : memref<98xf32, #tpu.memory_space<smem>>
    %c76 = arith.constant 76 : index
    %489 = memref.load %arg1[%c76] : memref<98xf32, #tpu.memory_space<smem>>
    %c0_182 = arith.constant 0 : index
    %c131 = arith.constant 131 : index
    %490 = vector.load %arg5[%c0_182, %c131] : memref<1x512xf32, #tpu.memory_space<vmem>>, vector<1x256xf32>
    %c0_183 = arith.constant 0 : index
    %c131_184 = arith.constant 131 : index
    %491 = vector.load %arg6[%c0_183, %c131_184] : memref<1x512xf32, #tpu.memory_space<vmem>>, vector<1x256xf32>
    %492 = vector.broadcast %488 : f32 to vector<1x256xf32>
    %493 = arith.mulf %492, %490 : vector<1x256xf32>
    %494 = arith.addf %487, %493 : vector<1x256xf32>
    %495 = vector.broadcast %489 : f32 to vector<1x256xf32>
    %496 = arith.mulf %495, %491 : vector<1x256xf32>
    %497 = arith.addf %494, %496 : vector<1x256xf32>
    %c34 = arith.constant 34 : index
    %498 = memref.load %arg1[%c34] : memref<98xf32, #tpu.memory_space<smem>>
    %c83_185 = arith.constant 83 : index
    %499 = memref.load %arg1[%c83_185] : memref<98xf32, #tpu.memory_space<smem>>
    %c0_186 = arith.constant 0 : index
    %c147 = arith.constant 147 : index
    %500 = vector.load %arg5[%c0_186, %c147] : memref<1x512xf32, #tpu.memory_space<vmem>>, vector<1x256xf32>
    %c0_187 = arith.constant 0 : index
    %c147_188 = arith.constant 147 : index
    %501 = vector.load %arg6[%c0_187, %c147_188] : memref<1x512xf32, #tpu.memory_space<vmem>>, vector<1x256xf32>
    %502 = vector.broadcast %498 : f32 to vector<1x256xf32>
    %503 = arith.mulf %502, %500 : vector<1x256xf32>
    %504 = arith.addf %497, %503 : vector<1x256xf32>
    %505 = vector.broadcast %499 : f32 to vector<1x256xf32>
    %506 = arith.mulf %505, %501 : vector<1x256xf32>
    %507 = arith.addf %504, %506 : vector<1x256xf32>
    %c41 = arith.constant 41 : index
    %508 = memref.load %arg1[%c41] : memref<98xf32, #tpu.memory_space<smem>>
    %c90 = arith.constant 90 : index
    %509 = memref.load %arg1[%c90] : memref<98xf32, #tpu.memory_space<smem>>
    %c0_189 = arith.constant 0 : index
    %c163 = arith.constant 163 : index
    %510 = vector.load %arg5[%c0_189, %c163] : memref<1x512xf32, #tpu.memory_space<vmem>>, vector<1x256xf32>
    %c0_190 = arith.constant 0 : index
    %c163_191 = arith.constant 163 : index
    %511 = vector.load %arg6[%c0_190, %c163_191] : memref<1x512xf32, #tpu.memory_space<vmem>>, vector<1x256xf32>
    %512 = vector.broadcast %508 : f32 to vector<1x256xf32>
    %513 = arith.mulf %512, %510 : vector<1x256xf32>
    %514 = arith.addf %507, %513 : vector<1x256xf32>
    %515 = vector.broadcast %509 : f32 to vector<1x256xf32>
    %516 = arith.mulf %515, %511 : vector<1x256xf32>
    %517 = arith.addf %514, %516 : vector<1x256xf32>
    %c48 = arith.constant 48 : index
    %518 = memref.load %arg1[%c48] : memref<98xf32, #tpu.memory_space<smem>>
    %c97_192 = arith.constant 97 : index
    %519 = memref.load %arg1[%c97_192] : memref<98xf32, #tpu.memory_space<smem>>
    %c0_193 = arith.constant 0 : index
    %c179 = arith.constant 179 : index
    %520 = vector.load %arg5[%c0_193, %c179] : memref<1x512xf32, #tpu.memory_space<vmem>>, vector<1x256xf32>
    %c0_194 = arith.constant 0 : index
    %c179_195 = arith.constant 179 : index
    %521 = vector.load %arg6[%c0_194, %c179_195] : memref<1x512xf32, #tpu.memory_space<vmem>>, vector<1x256xf32>
    %522 = vector.broadcast %518 : f32 to vector<1x256xf32>
    %523 = arith.mulf %522, %520 : vector<1x256xf32>
    %524 = arith.addf %517, %523 : vector<1x256xf32>
    %525 = vector.broadcast %519 : f32 to vector<1x256xf32>
    %526 = arith.mulf %525, %521 : vector<1x256xf32>
    %527 = arith.addf %524, %526 : vector<1x256xf32>
    %c6_196 = arith.constant 6 : index
    %c0_197 = arith.constant 0 : index
    %528 = vector.load %arg2[%c6_196, %c0_197] : memref<7x256xf32, #tpu.memory_space<vmem>>, vector<1x256xf32>
    %529 = arith.mulf %528, %527 : vector<1x256xf32>
    %530 = arith.addf %456, %529 : vector<1x256xf32>
    %531 = arith.negf %530 : vector<1x256xf32>
    %532 = math.exp %531 : vector<1x256xf32>
    %cst_198 = arith.constant 1.000000e+00 : f32
    %533 = vector.broadcast %cst_198 : f32 to vector<1x256xf32>
    %534 = arith.addf %533, %532 : vector<1x256xf32>
    %535 = arith.divf %533, %534 : vector<1x256xf32>
    %c0_199 = arith.constant 0 : index
    %c0_200 = arith.constant 0 : index
    %c0_201 = arith.constant 0 : index
    %536 = vector.load %arg4[%c0_199, %c0_200, %c0_201] : memref<1x1x256xf32, #tpu.memory_space<vmem>>, vector<1x1x256xf32>
    %537 = vector.shape_cast %536 : vector<1x1x256xf32> to vector<1x256xf32>
    %538 = vector.shape_cast %535 : vector<1x256xf32> to vector<1x1x256xf32>
    tpu.vector_store %arg4[%c0_199, %c0_200, %c0_201], %538 {strides = array<i32>} : memref<1x1x256xf32, #tpu.memory_space<vmem>>, vector<1x1x256xf32>,
    return
  }
  func.func @transform_0(%arg0: i32) -> i32 {
    %c0_i32 = arith.constant 0 : i32
    %c0_i32_0 = arith.constant 0 : i32
    return %c0_i32 : i32
  }
  func.func @transform_1(%arg0: i32) -> (i32, i32) {
    %c0_i32 = arith.constant 0 : i32
    %c0_i32_0 = arith.constant 0 : i32
    %c0_i32_1 = arith.constant 0 : i32
    return %c0_i32, %c0_i32_0 : i32, i32
  }
  func.func @transform_2(%arg0: i32) -> (i32, i32, i32) {
    %c0_i32 = arith.constant 0 : i32
    %c0_i32_0 = arith.constant 0 : i32
    %c0_i32_1 = arith.constant 0 : i32
    return %arg0, %c0_i32, %c0_i32_0 : i32, i32, i32
  }
  func.func @transform_3(%arg0: i32) -> (i32, i32, i32) {
    %c0_i32 = arith.constant 0 : i32
    %c0_i32_0 = arith.constant 0 : i32
    %c0_i32_1 = arith.constant 0 : i32
    return %arg0, %c0_i32, %c0_i32_0 : i32, i32, i32
  }
}

</mosaic_0001>

<bundles_post_ra>
// kernel: tpu_custom_call.1
= control target key start
LH: loop header
LB: loop body
LE: loop exit
PB: predicated region body
PF: predicated region fallthrough
CT: control target
= control target key end

     0   :  { %8 = vsyncpa [#allocation7], 0  ;;  %s2578_s0 = inlined_call_operand.hbm [shape: f32[98], index: 0, kind: input, shape index: {}]   ;;  %s2579_s1 = inlined_call_operand.hbm [shape: f32[7,256], index: 1, kind: input, shape index: {}]   ;;  %s2580_s2 = inlined_call_operand.hbm [shape: f32[2,4,256], index: 2, kind: input, shape index: {}]   ;;  %s2581_s3 = inlined_call_operand.hbm [shape: f32[2,1,256], index: 3, kind: output, shape index: {}]  }
   0x1   :  { %9 = vsyncpa [#allocation5], 0 }
   0x2   :  { %10 = vsyncpa [#allocation10], 0 }
   0x3   :  { %12 = vsyncpa [#allocation10 + $0x1], 0 }
   0x4   :  { %13 = vsyncpa [#allocation6], 0 }
   0x5   :  { %15 = vsyncpa [#allocation6 + $0x1], 0  ;;  %s1784_s12 = smov 0   ;;  %s1786_s13 = smov 0  }
   0x6   :  { %s1788_s14 = smov 0   ;;  %s1790_s15 = smov 0  }
   0x7 LB: > { %s1805_s16 = sadd.s32 4294967295, %s1744_s15   ;;  %s1395_s17 = sadd.s32 4294967294, %s1744_s15   ;;  %s1744_s15 = sphi %s1790_s15, %s2609_s15   ;;  %s1740_s14 = sphi %s1788_s14, %s2608_s14   ;;  %s1736_s13 = sphi %s1786_s13, %s2607_s13   ;;  %s1732_s12 = sphi %s1784_s12, %s2606_s12  }
   0x8   : > { %p83_p0 = scmp.ne.s32.totalorder %s1736_s13, %s1732_s12  ;;  %p2582_p1 = scmp.eq.s32.totalorder %s1805_s16, 0 }
   0x9   : > { %p113_p3 = scmp.eq.s32.totalorder %s1395_s17, 1  ;;  %p1396_p5 = scmp.ge.s32.totalorder %s1744_s15, 1 }
   0xa   : > { %p1814_p4 = por %p2582_p1, %p83_p0  ;;  %p120_p7 = scmp.lt.s32.totalorder %s1744_s15, 3 }
   0xb   : > { %p1819_p6 = por %p113_p3, %p83_p0  ;;  %s1746_s21 = smov [#allocation8]  }
   0xc   : > { %s2587_s18 = scalar_select %p1814_p4, 1, 0 }
   0xd   : > { %s2588_s19 = scalar_select %p1819_p6, 1, 0 }
   0xe   : > { %p1824_p8 = pnand %p1396_p5, %p120_p7  ;;  %s142_s22 = sshll.u32 %s1746_s21, 4  ;;  %s1831_s22 = int_to_ptr.vmem [resolvable:$true] %s142_s22 }
   0xf   : > { %s1840_s24 = sadd.s32 1, %s1744_s15   ;;  %s70_s26 = sadd.s32 1, %s1740_s14 }
  0x10   : > { %p1525_p10 = pneg %p1824_p8  ;;  %s67_s25 = ssub.s32 %s1744_s15, %s1840_s24 }
  0x11   : > { %p1845_p12 = scmp.eq.s32.totalorder %s67_s25, 0  ;;  %s1599_s30 = scalar_lea.hbm %s2578_s0, 16 }
  0x12   : > { %p1835_p11 = pnand %p1525_p10, %p2582_p1  ;;  %p1600_p13 = scmp.ne.s32.totalorder %s2578_s0, %s1599_s30 }
  0x13   : > { %p1606_p7 = scmp.lt.u32.totalorder %s1599_s30, %s2578_s0 }
  0x14   : > { %p1601_p0 = pneg %p1835_p11 }
  0x16   : > { %p1602_p3 = pnand %p1601_p0, %p1600_p13 }
  0x18   : > { %p1603_p5 = pneg %p1602_p3 }
  0x1a   : > { %p1608_p10 = pnand %p1606_p7, %p1603_p5 }
  0x1c   : > { %1611 = shalt.err (!%p1608_p10)
}
  0x1d   : > { %s1747_s8 = smov [#allocation4]   ;;  %s1612_s21 = scalar_lea.hbm %s2579_s1, 256 }
  0x1e   : > { %1528 = dma.hbm_to_smem (!%p1835_p11), %s2578_s0, 16, %s1747_s8, [#allocation7]  }
  0x1f   : > { %p1613_p13 = scmp.ne.s32.totalorder %s2579_s1, %s1612_s21  ;;  %p1619_p7 = scmp.lt.u32.totalorder %s1612_s21, %s2579_s1 }
  0x21   : > { %p1615_p3 = pnand %p1613_p13, %p1601_p0 }
  0x23   : > { %p1616_p5 = pneg %p1615_p3 }
  0x25   : > { %p1621_p10 = pnand %p1619_p7, %p1616_p5 }
  0x27   : > { %1624 = shalt.err (!%p1621_p10)
}
  0x28   : > { %s1625_s4 = scalar_lea.vmem %s1831_s22, 256  ;;  %p1633_p6 = scmp.lt.s32.totalorder %s1831_s22, %s1831_s22 }
  0x29   : > { %p1626_p9 = scmp.ne.s32.totalorder %s1831_s22, %s1625_s4  ;;  %p1634_p13 = scmp.lt.s32.totalorder %s1625_s4, %s1625_s4 }
  0x2b   : > { %p1628_p1 = pnand %p1626_p9, %p1601_p0  ;;  %p1635_p3 = por %p1634_p13, %p1633_p6 }
  0x2d   : > { %p1629_p2 = pneg %p1628_p1 }
  0x2f   : > { %p1636_p4 = pnand %p1635_p3, %p1629_p2 }
  0x31   : > { %1639 = shalt.err (!%p1636_p4)
}
  0x32   : > { %1531 = dma.hbm_to_vmem [thread:$0]  (!%p1835_p11), %s2579_s1, 256, %s1831_s22, [#allocation5]  }
  0x33   : > { %s1898_s7 = scalar_select %p1845_p12, %s1740_s14, %s70_s26  }
  0x34   : > { %p77_p1 = scmp.ne.s32.totalorder %s1740_s14, %s1736_s13  ;;  %p78_p2 = scmp.eq.s32.totalorder %s1744_s15, 0 }
  0x35   : > { %p1542_p4 = scmp.lt.s32.totalorder %s1744_s15, 2  ;;  %s153_s23 = sand.u32 1, %s1740_s14  }
  0x36   : > { %p79_p6 = por %p78_p2, %p77_p1  ;;  %p2592_p9 = scmp.eq.s32.totalorder %s1805_s16, 1 }
  0x37   : > { %s1400_s9 = sshll.u32 %s153_s23, 3  ;;  %s1511_s10 = sshll.u32 %s1744_s15, 7 }
  0x38   : > { %p1907_p0 = por %p2592_p9, %p77_p1  ;;  %s1915_s22 = scalar_lea.hbm %s2580_s2, %s1511_s10 }
  0x39   : > { %s157_s26 = scalar_lea.vmem [#allocation9], %s1400_s9  ;;  %p1919_p11 = pnand %p1542_p4, %p79_p6 }
  0x3a   : > { %s2593_s8 = scalar_select %p1907_p0, 1, 0 }
  0x3b   : > { %s165_s27 = sshll.u32 %s157_s26, 4  ;;  %s154_s25 = scalar_lea.sflag [#allocation10], %s153_s23  ;;  %s1917_s27 = int_to_ptr.vmem [resolvable:$true] %s165_s27 }
  0x3c   : > { %s1640_s28 = scalar_lea.hbm %s1915_s22, 128  ;;  %p1642_p5 = pneg %p1919_p11 }
  0x3d   : > { %p1641_p12 = scmp.ne.s32.totalorder %s1915_s22, %s1640_s28  ;;  %s1645_s4 = scalar_lea.hbm %s2580_s2, 256 }
  0x3e   : > { %p1646_p13 = scmp.lt.u32.totalorder %s1915_s22, %s2580_s2  ;;  %p1647_p3 = scmp.lt.u32.totalorder %s1645_s4, %s1640_s28 }
  0x3f   : > { %p1643_p7 = pnand %p1642_p5, %p1641_p12  ;;  %p1649_p2 = scmp.lt.u32.totalorder %s1640_s28, %s1915_s22 }
  0x40   : > { %p1648_p1 = por %p1647_p3, %p1646_p13 }
  0x41   : > { %p1644_p10 = pneg %p1643_p7 }
  0x42   : > { %p1650_p4 = por %p1649_p2, %p1648_p1 }
  0x44   : > { %p1651_p6 = pnand %p1650_p4, %p1644_p10 }
  0x46   : > { %1654 = shalt.err (!%p1651_p6)
}
  0x47   : > { %s1655_s23 = scalar_lea.vmem %s1917_s27, 128  ;;  %s1748_s9 = smov [#allocation9]  }
  0x48   : > { %p1656_p9 = scmp.ne.s32.totalorder %s1917_s27, %s1655_s23  ;;  %s1660_s10 = sshll.u32 %s1748_s9, 4  ;;  %s1661_s10 = int_to_ptr.vmem [resolvable:$false] %s1660_s10 }
  0x49   : > { %s1662_s11 = scalar_lea.vmem %s1661_s10, 256  ;;  %p1663_p0 = scmp.lt.s32.totalorder %s1917_s27, %s1661_s10 }
  0x4a   : > { %p1658_p12 = pnand %p1656_p9, %p1642_p5  ;;  %p1664_p13 = scmp.lt.s32.totalorder %s1662_s11, %s1655_s23 }
  0x4c   : > { %p1659_p7 = pneg %p1658_p12  ;;  %p1665_p3 = por %p1664_p13, %p1663_p0 }
  0x4e   : > { %p1666_p1 = pnand %p1665_p3, %p1659_p7 }
  0x50   : > { %1669 = shalt.err (!%p1666_p1)
}
  0x51   : > { %1535 = dma.hbm_to_vmem [thread:$0]  (!%p1919_p11), %s1915_s22, 128, %s1917_s27, %s154_s25  }
  0x52   : > { %174 = sbr.rel (%p1824_p8) target bundleno = 579 (0x243), region = 32  ;;  %p2595_p5 = scmp.eq.s32.totalorder (!%p1824_p8), %s1805_s16, 0 }
  0x59   : > { %1715 = dma.done.wait (%p2595_p5), [#allocation7], 16   ;;  %p2596_p10 = pmov %p2595_p5 }
  0x5a   : > { %p2597_p2 = pmov %p2595_p5 }
  0x5b   : > { %1717 = vsyncadd (%p2596_p10), [#allocation7], 4294967280 }
  0x5c   : > { %1719 = dma.done.wait (%p2597_p2), [#allocation5], 256   ;;  %p2598_p0 = pmov %p2597_p2 }
  0x5d   : > { %s1959_s17 = sand.u32 1, %s1736_s13   ;;  %p2599_p8 = scmp.ne.s32.totalorder %s2587_s18, 0 }
  0x5e   : > { %1721 = vsyncadd (%p2598_p0), [#allocation5], 4294967040  ;;  %s1406_s20 = sshll.u32 %s1959_s17, 3  ;;  %s185_s22 = scalar_lea.sflag [#allocation10], %s1959_s17 }
  0x5f   : > { %s188_s26 = scalar_lea.vmem [#allocation9], %s1406_s20 }
  0x60   : > { %1723 = dma.done.wait (%p2599_p8), %s185_s22, 128  }
  0x61   : > { %1725 = vsyncadd (%p2599_p8), %s185_s22, 4294967168 }
  0x62   : > { %193 = sfence }
  0x63   : > { %v212_v0 = vld [vmem:[%s188_s26] sm:$0xff]  ;;  %vm216_vm0 = vcmask 1043456   ;;  %v248_v1 = vlaneseq  ;;  %v1749_v7 = vmov 0.0   ;;  %v1750_v16 = vmov 1966171168   ;;  %s1411_s18 = sld [smem:[#allocation4 + $0xe]] }
  0x64   : > { %v214_v2 = vcombine.high %v212_v0, %v212_v0  ;;  %v217_v3 = vsel %vm216_vm0, %v212_v0, -inf  ;;  %v231_v4 = vsel %vm216_vm0, %v212_v0, 0.0  ;;  %v260_v17 = vunpack.c.l.s4 %v1750_v16  ;;  %s1409_s27 = sld [smem:[#allocation4 + $0x7]]  ;;  %s1439_s21 = sld [smem:[#allocation4 + $0x10]] }
  0x65   : > { %v218_v5 = vrot.slane %v217_v3, 4  ;;  %vm250_vm1 = vcmp.lt.s32.totalorder %v248_v1, 128  ;;  %v232_v8 = vrot.slane %v231_v4, 4  ;;  %v263_v27 = vshrl.u32 %v248_v1, 7  ;;  %s1423_s25 = sld [smem:[#allocation4 + $0x8]]  ;;  %s1465_s28 = sld [smem:[#allocation4 + $0xb]] }
  0x66   : > { %v224_v6 = vsel %vm216_vm0, %v214_v2, -inf  ;;  %252 = vst.msk [vmem:[#allocation2] sm:$0x1] %vm250_vm1, %v1749_v7  ;;  %253 = vst.msk [vmem:[#allocation2 + $0x3] sm:$0x1] %vm250_vm1, %v1749_v7  ;;  %v238_v11 = vsel %vm216_vm0, %v214_v2, 0.0  ;;  %v261_v26 = vunpack.c.0.s8 %v260_v17 }
  0x67   : > { %254 = vst.msk [vmem:[#allocation3] sm:$0x1] %vm250_vm1, %v1749_v7  ;;  %255 = vst.msk [vmem:[#allocation3 + $0x3] sm:$0x1] %vm250_vm1, %v1749_v7  ;;  %v219_v9 = vmax.f32 %v217_v3, %v218_v5  ;;  %v225_v10 = vrot.slane %v224_v6, 4  ;;  %v233_v12 = vadd.f32 %v232_v8, %v231_v4  ;;  %v239_v13 = vrot.slane %v238_v11, 4 }
  0x68   : > { %v264_v35 = vsub.s32 %v261_v26, %v263_v27  ;;  %vm1971_vm2 = vcmp.lt.s32.totalorder %v248_v1, 256  ;;  %s1437_s29 = sld [smem:[#allocation4 + $0x9]]  ;;  %s1427_s30 = sld [smem:[#allocation4 + $0x16]]  ;;  %vm314_vm3 = vcmask 916480   ;;  %vm335_vm4 = vcmask 785408  }
  0x69   : > { %v220_v14 = vrot.slane %v219_v9, 2  ;;  %v226_v15 = vmax.f32 %v224_v6, %v225_v10  ;;  %v234_v18 = vrot.slane %v233_v12, 2  ;;  %v240_v19 = vadd.f32 %v239_v13, %v238_v11  ;;  %s1425_s4 = sld [smem:[#allocation4 + $0xf]]  ;;  %s1751_s5 = smov 96  }
  0x6a   : > { %v329_v46 = vstv %s1411_s18  ;;  %v308_v47 = vstv %s1409_s27  ;;  %v613_v49 = vstv %s1439_s21  ;;  %s1752_s6 = smov 112   ;;  %s1453_s23 = sld [smem:[#allocation4 + $0x11]]  ;;  %vm356_vm5 = vcmask 654336  }
  0x6b   : > { %v221_v20 = vmax.f32 %v219_v9, %v220_v14  ;;  %v227_v21 = vrot.slane %v226_v15, 2  ;;  %v235_v22 = vadd.f32 %v234_v18, %v233_v12  ;;  %v241_v23 = vrot.slane %v240_v19, 2  ;;  %s1451_s9 = sld [smem:[#allocation4 + $0xa]]  ;;  %s1991_s10 = sld [smem:[#allocation4 + $0x38]] }
  0x6c   : > { %v454_v50 = vstv %s1423_s25  ;;  %v872_v55 = vstv %s1465_s28  ;;  %s1413_s11 = sld [smem:[#allocation4 + $0x15]]  ;;  %s1997_s20 = sld [smem:[#allocation4 + $0x39]]  ;;  %vm379_vm6 = vcmask 523264   ;;  %vm400_vm7 = vcmask 392192  }
  0x6d   : > { %v222_v24 = vrot.slane %v221_v20, 1  ;;  %v228_v25 = vmax.f32 %v226_v15, %v227_v21  ;;  %v236_v28 = vrot.slane %v235_v22, 1  ;;  %v242_v29 = vadd.f32 %v241_v23, %v240_v19  ;;  %s1999_s22 = sld [smem:[#allocation4]]  ;;  %s1408_s18 = sld [smem:[#allocation4 + $0x31]] }
  0x6e   : > { %v593_v56 = vstv %s1437_s29  ;;  %v494_v59 = vstv %s1427_s30  ;;  %s2001_s26 = sld [smem:[#allocation4 + $0x40]]  ;;  %s2003_s27 = sld [smem:[#allocation4 + $0x1]]  ;;  %vm421_vm8 = vcmask 261120   ;;  %vm578_vm9 = vcmask 408576  }
  0x6f   : > { %v223_v30 = vmax.f32 %v221_v20, %v222_v24  ;;  %v229_v31 = vrot.slane %v228_v25, 1  ;;  %v237_v32 = vadd.f32 %v236_v28, %v235_v22  ;;  %v243_v33 = vrot.slane %v242_v29, 1  ;;  %s2005_s21 = sld [smem:[#allocation4 + $0x3a]]  ;;  %s2585_s28 = smov 80  }
  0x70   : > { %v474_v60 = vstv %s1425_s4  ;;  %v752_v63 = vstv %s1453_s23  ;;  %s2007_s25 = sld [smem:[#allocation4 + $0x32]]  ;;  %s2013_s29 = sld [smem:[#allocation4 + $0x3b]]  ;;  %vm439_vm10 = vcmask 416768   ;;  %vm717_vm11 = vcmask 400384  }
  0x71   : > { %v230_v34 = vmax.f32 %v228_v25, %v229_v31  ;;  %v244_v36 = vadd.f32 %v243_v33, %v242_v29  ;;  %v246_v37 = vmul.f32 0.25, %v237_v32  ;;  %v732_v0 = vstv %s1451_s9  ;;  %s2015_s30 = sld [smem:[#allocation4 + $0x4]]  ;;  %s2020_s4 = sld [smem:[#allocation4 + $0x35]] }
  0x72   : > { %v318_v4 = vstv %s1991_s10  ;;  %v350_v5 = vstv %s1413_s11  ;;  %s2022_s23 = sld [smem:[#allocation4 + $0x2]]  ;;  %s2024_s9 = sld [smem:[#allocation4 + $0x33]]  ;;  %v463_v8 = vstv %s1997_s20  ;;  %vm996_vm12 = vcmask 384000  }
  0x73   : > { %v258_v38 = vcombine.low %v223_v30, %v230_v34  ;;  %v247_v39 = vmul.f32 0.25, %v244_v36  ;;  %v300_v9 = vstv %s1999_s22  ;;  %s2035_s10 = sld [smem:[#allocation4 + $0x41]]  ;;  %v303_v11 = vstv %s1408_s18  ;;  %s2038_s11 = sld [smem:[#allocation4 + $0x3]] }
  0x74   : > { %v483_v10 = vstv %s2001_s26  ;;  %v446_v14 = vstv %s2003_s27  ;;  %s2042_s20 = sld [smem:[#allocation4 + $0x34]]  ;;  %s2602_s22 = smov 80   ;;  %vm1135_vm13 = vcmask 375808   ;;  %vm1274_vm14 = vcmask 367616  }
  0x75   : > { %v265_v40 = vrot.slane %v258_v38, %v264_v35  ;;  %v279_v42 = vcombine.low %v246_v37, %v247_v39  ;;  %v602_v19 = vstv %s2005_s21  ;;  %s2055_s26 = sld [smem:[#allocation4 + $0xc]]  ;;  %s2075_s27 = sld [smem:[#allocation4 + $0x5]] }
  0x76   : > { %v449_v17 = vstv %s2007_s25  ;;  %v741_v22 = vstv %s2013_s29  ;;  %s2057_s18 = sld [smem:[#allocation4 + $0x3c]]  ;;  %s2077_s21 = sld [smem:[#allocation4 + $0x36]] }
  0x77   : > { %v272_v43 = vrot.slane %v265_v40, %v264_v35  ;;  %v286_v44 = vrot.slane %v279_v42, %v264_v35  ;;  %v864_v23 = vstv %s2015_s30  ;;  %v867_v24 = vstv %s2020_s4  ;;  %s2081_s25 = sld [smem:[#allocation4 + $0x47]]  ;;  %s2083_s29 = sld [smem:[#allocation4 + $0x46]] }
  0x78   : > { %v585_v25 = vstv %s2022_s23  ;;  %v588_v31 = vstv %s2024_s9  ;;  %s2099_s30 = sld [smem:[#allocation4 + $0x17]]  ;;  %s1491_s4 = sld [smem:[#allocation4 + $0x6]] }
  0x79   : > { %276 = vst.msk [vmem:[#allocation2 + $0x1] sm:$0x3] %vm1971_vm2, %v272_v43  ;;  %v293_v45 = vrot.slane %v286_v44, %v264_v35  ;;  %v622_v36 = vstv %s2035_s10  ;;  %v724_v37 = vstv %s2038_s11  ;;  %s1492_s23 = sld [smem:[#allocation4 + $0x37]]  ;;  %s1480_s9 = sld [smem:[#allocation4 + $0x3d]] }
  0x7a   : > { %v727_v40 = vstv %s2042_s20  ;;  %s1467_s10 = sld [smem:[#allocation4 + $0x12]]  ;;  %s1415_s11 = sld [smem:[#allocation4 + $0x1c]] }
  0x7b   : > { %295 = vst.msk [vmem:[#allocation3 + $0x1] sm:$0x3] %vm1971_vm2, %v293_v45  ;;  %v1011_v45 = vstv %s2055_s26  ;;  %s1493_s20 = sld [smem:[#allocation4 + $0xd]]  ;;  %s1442_s26 = sld [smem:[#allocation4 + $0x48]] }
  0x7c   : > { %p2603_p4 = scmp.ne.s32.totalorder %s2593_s8, 0 }
  0x80   : > { %v1979_v48 = vld [vmem:[#allocation2] sm:$0x7] }
  0x81   : > { %v330_v51 = vmul.f32 %v329_v46, %v1979_v48  ;;  %v309_v52 = vmul.f32 %v308_v47, %v1979_v48  ;;  %v614_v53 = vmul.f32 %v613_v49, %v1979_v48  ;;  %v455_v54 = vmul.f32 %v454_v50, %v1979_v48 }
  0x82   : > { %v873_v57 = vmul.f32 %v872_v55, %v1979_v48  ;;  %v594_v58 = vmul.f32 %v593_v56, %v1979_v48  ;;  %v495_v61 = vmul.f32 %v494_v59, %v1979_v48  ;;  %v475_v62 = vmul.f32 %v474_v60, %v1979_v48  ;;  %v2017_v3 = vld [vmem:[#allocation3] sm:$0x7] }
  0x83   : > { %332 = vrot.lane.b32.xlu1 %v330_v51, %s1751_s5  ;;  %311 = vrot.lane.b32.xlu0 %v309_v52, %s1752_s6  ;;  %v753_v1 = vmul.f32 %v752_v63, %v1979_v48  ;;  %v733_v2 = vmul.f32 %v732_v0, %v1979_v48  ;;  %v319_v6 = vmul.f32 %v318_v4, %v2017_v3  ;;  %v881_v46 = vstv %s2057_s18  ;;  %s1429_s18 = sld [smem:[#allocation4 + $0x1d]] }
  0x84   : > { %v351_v7 = vmul.f32 %v350_v5, %v1979_v48  ;;  %v301_v12 = vmul.f32 %v300_v9, %v1979_v48  ;;  %v304_v13 = vmul.f32 %v303_v11, %v2017_v3  ;;  %v464_v15 = vmul.f32 %v463_v8, %v2017_v3 }
  0x85   : > { %v447_v16 = vmul.f32 %v446_v14, %v1979_v48  ;;  %v484_v18 = vmul.f32 %v483_v10, %v2017_v3  ;;  %v450_v21 = vmul.f32 %v449_v17, %v2017_v3  ;;  %v865_v27 = vmul.f32 %v864_v23, %v1979_v48  ;;  %v2133_v10 = vld [vmem:[#allocation2 + $0x1] sm:$0x7] }
  0x86   : > { %v2051_v20 = vadd.f32 %v304_v13, %v301_v12  ;;  %v868_v28 = vmul.f32 %v867_v24, %v2017_v3  ;;  %v586_v29 = vmul.f32 %v585_v25, %v1979_v48  ;;  %v603_v30 = vmul.f32 %v602_v19, %v2017_v3 }
  0x87   : > { %616 = vrot.lane.b32.xlu1 %v614_v53, %s1751_s5  ;;  %457 = vrot.lane.b32.xlu0 %v455_v54, %s1752_s6  ;;  %v2062_v26 = vadd.f32 %v450_v21, %v447_v16  ;;  %v742_v32 = vmul.f32 %v741_v22, %v2017_v3  ;;  %v589_v34 = vmul.f32 %v588_v31, %v2017_v3  ;;  %v1003_v51 = vstv %s2075_s27  ;;  %s1468_s27 = sld [smem:[#allocation4 + $0x43]]  ;;  %v772_v21 = vld [vmem:[#allocation2 + $0x1] sm:$0x3] }
  0x88   : > { %v2072_v33 = vadd.f32 %v868_v28, %v865_v27  ;;  %v725_v39 = vmul.f32 %v724_v37, %v1979_v48  ;;  %v728_v42 = vmul.f32 %v727_v40, %v2017_v3  ;;  %v623_v44 = vmul.f32 %v622_v36, %v2017_v3  ;;  %v773_v36 = vld [vmem:[#allocation3 + $0x1] sm:$0x3] }
  0x89   : > { %v2086_v38 = vadd.f32 %v589_v34, %v586_v29  ;;  %v1012_v49 = vmul.f32 %v1011_v45, %v1979_v48  ;;  %v882_v50 = vmul.f32 %v881_v46, %v2017_v3  ;;  %v1006_v52 = vstv %s2077_s21  ;;  %s1455_s21 = sld [smem:[#allocation4 + $0x18]] }
  0x8a   : > { %v2101_v47 = vadd.f32 %v728_v42, %v725_v39  ;;  %v503_v53 = vstv %s2081_s25  ;;  %v360_v54 = vstv %s2083_s29  ;;  %v1004_v55 = vmul.f32 %v1003_v51, %v1979_v48  ;;  %s1494_s25 = sld [smem:[#allocation4 + $0x3e]]  ;;  %s1481_s29 = sld [smem:[#allocation4 + $0x13]] }
  0x8b   : > { %875 = vrot.lane.b32.xlu1 %v873_v57, %s1752_s6  ;;  %596 = vrot.lane.b32.xlu0 %v594_v58, %s1752_s6  ;;  %v1007_v56 = vmul.f32 %v1006_v52, %v2017_v3  ;;  %v504_v58 = vmul.f32 %v503_v53, %v2017_v3  ;;  %v361_v59 = vmul.f32 %v360_v54, %v2017_v3  ;;  %v1145_v0 = vstv %s1492_s23  ;;  %s1456_s23 = sld [smem:[#allocation4 + $0x49]] }
  0x8c   : > { %v1020_v5 = vstv %s1480_s9  ;;  %v373_v11 = vstv %s1415_s11  ;;  %v1150_v12 = vstv %s1493_s20  ;;  %v514_v16 = vstv %s1429_s18  ;;  %s1443_s9 = sld [smem:[#allocation4 + $0x1e]]  ;;  %s1469_s11 = sld [smem:[#allocation4 + $0x19]] }
  0x8d   : > { %v2113_v57 = vadd.f32 %v1007_v56, %v1004_v55  ;;  %v1021_v8 = vmul.f32 %v1020_v5, %v2017_v3  ;;  %v374_v13 = vmul.f32 %v373_v11, %v2133_v10  ;;  %v1151_v14 = vmul.f32 %v1150_v12, %v1979_v48  ;;  %s1417_s20 = sld [smem:[#allocation4 + $0x23]]  ;;  %s1431_s18 = sld [smem:[#allocation4 + $0x24]] }
  0x8e   : > { %v901_v19 = vstv %s1468_s27  ;;  %s1470_s27 = sld [smem:[#allocation4 + $0x4a]] }
  0x8f   : > { %497 = vrot.lane.b32.xlu1 %v495_v61, %s2585_s28  ;;  %477 = vrot.lane.b32.xlu0 %v475_v62, %s1751_s5  ;;  %s2031_s28 = sld [smem:[#allocation4 + $0x3f]]  ;;  %v633_v61 = vstv %s2099_s30  ;;  %v1142_v62 = vstv %s1491_s4  ;;  %s1430_s30 = sld [smem:[#allocation4 + $0x4e]]  ;;  %v902_v23 = vmul.f32 %v901_v19, %v2017_v3 }
  0x90   : > { %v1143_v63 = vmul.f32 %v1142_v62, %v1979_v48  ;;  %v634_v4 = vmul.f32 %v633_v61, %v1979_v48  ;;  %v774_v22 = vstv %s1455_s21  ;;  %s1416_s4 = sld [smem:[#allocation4 + $0x4d]]  ;;  %v1159_v25 = vstv %s1494_s25  ;;  %s1457_s21 = sld [smem:[#allocation4 + $0x1f]] }
  0x91   : > { %v775_v24 = vmul.f32 %v774_v22, %v772_v21  ;;  %v1031_v27 = vstv %s1481_s29  ;;  %v1160_v28 = vmul.f32 %v1159_v25, %v2017_v3  ;;  %v783_v37 = vstv %s1456_s23  ;;  %s1496_s25 = sld [smem:[#allocation4 + $0x45]]  ;;  %s1483_s29 = sld [smem:[#allocation4 + $0x1a]] }
  0x92   : > { %v1032_v29 = vmul.f32 %v1031_v27, %v1979_v48  ;;  %v653_v39 = vstv %s1443_s9  ;;  %v784_v40 = vmul.f32 %v783_v37, %v773_v36  ;;  %s1418_s23 = sld [smem:[#allocation4 + $0x54]]  ;;  %s1458_s9 = sld [smem:[#allocation4 + $0x50]] }
  0x93   : > { %755 = vrot.lane.b32.xlu1 %v753_v1, %s1751_s5  ;;  %735 = vrot.lane.b32.xlu0 %v733_v2, %s1752_s6  ;;  %v1146_v1 = vmul.f32 %v1145_v0, %v2017_v3  ;;  %v654_v42 = vmul.f32 %v653_v39, %v2133_v10  ;;  %v534_v54 = vstv %s1431_s18  ;;  %s1433_s18 = sld [smem:[#allocation4 + $0x2b]] }
  0x94   : > { %v535_v56 = vmul.f32 %v534_v54, %v2133_v10 }
  0x95   : > { %v339_v35 = vstv %s2031_s28  ;;  %s2097_s28 = sld [smem:[#allocation4 + $0x42]]  ;;  %v523_v31 = vstv %s1430_s30  ;;  %s1755_s30 = smov 48  }
  0x96   : > { %v340_v43 = vmul.f32 %v339_v35, %v2017_v3 }
  0x97   : > { %321 = vrot.lane.b32.xlu1 %v319_v6, %s1752_s6  ;;  %353 = vrot.lane.b32.xlu0 %v351_v7, %s2602_s22  ;;  %v892_v6 = vstv %s1467_s10  ;;  %v2127_v7 = vadd.f32 %v1146_v1, %v1143_v63  ;;  %s1482_s10 = sld [smem:[#allocation4 + $0x44]]  ;;  %v1179_v61 = vstv %s1496_s25 }
  0x98   : > { %v893_v9 = vmul.f32 %v892_v6, %v1979_v48  ;;  %v1051_v62 = vstv %s1483_s29  ;;  %v1180_v63 = vmul.f32 %v1179_v61, %v2017_v3  ;;  %v803_v6 = vstv %s1458_s9  ;;  %s1498_s25 = sld [smem:[#allocation4 + $0x4c]]  ;;  %s1485_s29 = sld [smem:[#allocation4 + $0x21]] }
  0x99   : > { %v1052_v0 = vmul.f32 %v1051_v62, %v2133_v10  ;;  %v554_v21 = vstv %s1433_s18  ;;  %s1420_s9 = sld [smem:[#allocation4 + $0x5b]]  ;;  %s2247_s18 = sld [smem:[#allocation4 + $0x2d]] }
  0x9b   : > { %466 = vrot.lane.b32.xlu1 %v464_v15, %s1752_s6  ;;  %486 = vrot.lane.b32.xlu0 %v484_v18, %s1751_s5  ;;  %v761_v60 = vstv %s2097_s28  ;;  %v642_v15 = vstv %s1442_s26  ;;  %s1754_s28 = smov 64   ;;  %v515_v18 = vmul.f32 %v514_v16, %v2133_v10  ;;  %s1495_s26 = sld [smem:[#allocation4 + $0x14]] }
  0x9c   : > { %v762_v2 = vmul.f32 %v761_v60, %v2017_v3  ;;  %v643_v17 = vmul.f32 %v642_v15, %v2017_v3 }
  0x9f   : > { %605 = vrot.lane.b32.xlu1 %v603_v30, %s1752_s6  ;;  %744 = vrot.lane.b32.xlu0 %v742_v32, %s1752_s6  ;;  %v2150_v30 = vld [vmem:[#allocation3 + $0x1] sm:$0x7]  ;;  %v383_v32 = vstv %s1416_s4  ;;  %s1432_s4 = sld [smem:[#allocation4 + $0x55]] }
  0xa0   : > { %v524_v34 = vmul.f32 %v523_v31, %v2150_v30  ;;  %v384_v35 = vmul.f32 %v383_v32, %v2150_v30  ;;  %v1071_v31 = vstv %s1485_s29  ;;  %s2273_s29 = sld [smem:[#allocation4 + $0x5e]] }
  0xa1   : > { %v1072_v37 = vmul.f32 %v1071_v31, %v2133_v10 }
  0xa3   : > { %342 = vrot.lane.b32.xlu1 %v340_v43, %s1751_s5  ;;  %625 = vrot.lane.b32.xlu0 %v623_v44, %s1751_s5  ;;  %v1040_v43 = vstv %s1482_s10  ;;  %v912_v44 = vstv %s1469_s11  ;;  %s1445_s10 = sld [smem:[#allocation4 + $0x25]]  ;;  %s1484_s11 = sld [smem:[#allocation4 + $0x4b]] }
  0xa4   : > { %v1041_v45 = vmul.f32 %v1040_v43, %v2017_v3  ;;  %v913_v46 = vmul.f32 %v912_v44, %v2133_v10  ;;  %v804_v3 = vmul.f32 %v803_v6, %v2150_v30 }
  0xa5   : > { %v543_v1 = vstv %s1432_s4  ;;  %s1756_s4 = smov 32  }
  0xa7   : > { %1014 = vrot.lane.b32.xlu1 %v1012_v49, %s1752_s6  ;;  %884 = vrot.lane.b32.xlu0 %v882_v50, %s1752_s6  ;;  %v394_v49 = vstv %s1417_s20  ;;  %v1170_v50 = vstv %s1495_s26  ;;  %s1471_s20 = sld [smem:[#allocation4 + $0x20]]  ;;  %s1419_s26 = sld [smem:[#allocation4 + $0x2a]] }
  0xa8   : > { %v395_v51 = vmul.f32 %v394_v49, %v2133_v10  ;;  %v1171_v52 = vmul.f32 %v1170_v50, %v1979_v48 }
  0xa9   : > { %v1060_v11 = vstv %s1484_s11  ;;  %s2205_s11 = sld [smem:[#allocation4 + $0x2c]] }
  0xab   : > { %506 = vrot.lane.b32.xlu1 %v504_v58, %s2602_s22  ;;  %363 = vrot.lane.b32.xlu0 %v361_v59, %s2602_s22  ;;  %v921_v58 = vstv %s1470_s27  ;;  %v794_v59 = vstv %s1457_s21  ;;  %s1472_s27 = sld [smem:[#allocation4 + $0x51]]  ;;  %s1459_s21 = sld [smem:[#allocation4 + $0x26]] }
  0xac   : > { %v922_v48 = vmul.f32 %v921_v58, %v2150_v30  ;;  %v795_v60 = vmul.f32 %v794_v59, %v2133_v10 }
  0xad   : > { %v932_v12 = vstv %s1471_s20  ;;  %v415_v15 = vstv %s1419_s26  ;;  %s2214_s20 = sld [smem:[#allocation4 + $0x52]]  ;;  %s2216_s26 = sld [smem:[#allocation4 + $0x27]] }
  0xaf   : > { %764 = vrot.lane.b32.xlu1 %v762_v2, %s1751_s5  ;;  %636 = vrot.lane.b32.xlu0 %v634_v4, %s2602_s22  ;;  %v404_v2 = vstv %s1418_s23  ;;  %v544_v4 = vmul.f32 %v543_v1, %v2150_v30  ;;  %s1434_s23 = sld [smem:[#allocation4 + $0x5c]] }
  0xb0   : > { %v405_v5 = vmul.f32 %v404_v2, %v2150_v30 }
  0xb1   : > { %v814_v25 = vstv %s1459_s21  ;;  %s2267_s21 = sld [smem:[#allocation4 + $0x28]] }
  0xb3   : > { %1023 = vrot.lane.b32.xlu1 %v1021_v8, %s1752_s6  ;;  %895 = vrot.lane.b32.xlu0 %v893_v9, %s1751_s5  ;;  %v673_v8 = vstv %s1445_s10  ;;  %s2203_s10 = sld [smem:[#allocation4 + $0x57]]  ;;  %v952_v62 = vstv %s2216_s26  ;;  %s2333_s26 = sld [smem:[#allocation4 + $0x5a]] }
  0xb4   : > { %v674_v9 = vmul.f32 %v673_v8, %v2133_v10 }
  0xb7   : > { %376 = vrot.lane.b32.xlu1 %v374_v13, %s1754_s28  ;;  %1153 = vrot.lane.b32.xlu0 %v1151_v14, %s1752_s6  ;;  %v1061_v13 = vmul.f32 %v1060_v11, %v2150_v30  ;;  %v933_v14 = vmul.f32 %v932_v12, %v2133_v10 }
  0xbb   : > { %645 = vrot.lane.b32.xlu1 %v643_v17, %s2602_s22  ;;  %517 = vrot.lane.b32.xlu0 %v515_v18, %s1754_s28  ;;  %v416_v17 = vmul.f32 %v415_v15, %v2133_v10 }
  0xbf   : > { %904 = vrot.lane.b32.xlu1 %v902_v23, %s1751_s5  ;;  %777 = vrot.lane.b32.xlu0 %v775_v24, %s2602_s22  ;;  %v555_v23 = vmul.f32 %v554_v21, %v2133_v10  ;;  %v941_v24 = vstv %s1472_s27  ;;  %s2265_s27 = sld [smem:[#allocation4 + $0x53]] }
  0xc0   : > { %v942_v27 = vmul.f32 %v941_v24, %v2150_v30  ;;  %v1091_v24 = vstv %s2267_s21  ;;  %s1407_s21 = sshll.u32 %s1959_s17, 1 }
  0xc3   : > { %1162 = vrot.lane.b32.xlu1 %v1160_v28, %s1752_s6  ;;  %1034 = vrot.lane.b32.xlu0 %v1032_v29, %s1751_s5  ;;  %s1444_s6 = sld [smem:[#allocation4 + $0x4f]]  ;;  %v815_v28 = vmul.f32 %v814_v25, %v2133_v10  ;;  %v1199_v29 = vstv %s1498_s25  ;;  %s2271_s25 = sld [smem:[#allocation4 + $0x2e]] }
  0xc4   : > { %v1200_v36 = vmul.f32 %v1199_v29, %v2150_v30 }
  0xc7   : > { %526 = vrot.lane.b32.xlu1 %v524_v34, %s1754_s28  ;;  %386 = vrot.lane.b32.xlu0 %v384_v35, %s1754_s28 }
  0xc9   : > { %v662_v53 = vstv %s1444_s6  ;;  %s1497_s6 = sld [smem:[#allocation4 + $0x1b]]  ;;  %v972_v29 = vstv %s2271_s25  ;;  %s1512_s25 = sshll.u32 %s1805_s16, 5 }
  0xca   : > { %v663_v55 = vmul.f32 %v662_v53, %v2150_v30  ;;  %v693_v53 = vstv %s2205_s11  ;;  %s2313_s11 = sld [smem:[#allocation4 + $0x5f]]  ;;  %s1763_s16 = smov [#allocation11]  }
  0xcb   : > { %786 = vrot.lane.b32.xlu1 %v784_v40, %s2602_s22  ;;  %656 = vrot.lane.b32.xlu0 %v654_v42, %s1754_s28  ;;  %v563_v40 = vstv %s1434_s23  ;;  %v425_v42 = vstv %s1420_s9  ;;  %s2279_s23 = sld [smem:[#allocation4 + $0x29]] }
  0xcc   : > { %v564_v49 = vmul.f32 %v563_v40, %v2150_v30  ;;  %v426_v50 = vmul.f32 %v425_v42, %v2150_v30  ;;  %s2284_s9 = sld [smem:[#allocation4 + $0x59]] }
  0xcf   : > { %1043 = vrot.lane.b32.xlu1 %v1041_v45, %s1751_s5  ;;  %915 = vrot.lane.b32.xlu0 %v913_v46, %s2602_s22  ;;  %v1190_v16 = vstv %s1497_s6  ;;  %s2230_s6 = sld [smem:[#allocation4 + $0x5d]] }
  0xd0   : > { %v1191_v18 = vmul.f32 %v1190_v16, %v2133_v10 }
  0xd1   : > { %v1230_v42 = vstv %s2279_s23 }
  0xd3   : > { %397 = vrot.lane.b32.xlu1 %v395_v51, %s1755_s30  ;;  %1173 = vrot.lane.b32.xlu0 %v1171_v52, %s1751_s5  ;;  %v823_v52 = vstv %s2203_s10  ;;  %s2311_s10 = sld [smem:[#allocation4 + $0x2f]] }
  0xd4   : > { %v824_v59 = vmul.f32 %v823_v52, %v2150_v30 }
  0xd5   : > { %v702_v6 = vstv %s2230_s6  ;;  %s2349_s6 = sld [smem:[#allocation4 + $0x30]] }
  0xd7   : > { %665 = vrot.lane.b32.xlu1 %v663_v55, %s1754_s28  ;;  %537 = vrot.lane.b32.xlu0 %v535_v56, %s1755_s30 }
  0xdb   : > { %924 = vrot.lane.b32.xlu1 %v922_v48, %s2602_s22  ;;  %797 = vrot.lane.b32.xlu0 %v795_v60, %s1754_s28  ;;  %v694_v48 = vmul.f32 %v693_v53, %v2133_v10  ;;  %v973_v53 = vmul.f32 %v972_v29, %v2133_v10 }
  0xdf   : > { %1182 = vrot.lane.b32.xlu1 %v1180_v63, %s1751_s5  ;;  %1054 = vrot.lane.b32.xlu0 %v1052_v0, %s2602_s22  ;;  %s1446_s5 = sld [smem:[#allocation4 + $0x56]] }
  0xe3   : > { %546 = vrot.lane.b32.xlu1 %v544_v4, %s1755_s30  ;;  %407 = vrot.lane.b32.xlu0 %v405_v5, %s1755_s30  ;;  %v953_v5 = vmul.f32 %v952_v62, %v2133_v10 }
  0xe5   : > { %v682_v19 = vstv %s1446_s5  ;;  %s2232_s5 = sld [smem:[#allocation4 + $0x22]] }
  0xe6   : > { %v683_v22 = vmul.f32 %v682_v19, %v2150_v30 }
  0xe7   : > { %806 = vrot.lane.b32.xlu1 %v804_v3, %s1754_s28  ;;  %676 = vrot.lane.b32.xlu0 %v674_v9, %s1755_s30  ;;  %v703_v9 = vmul.f32 %v702_v6, %v2150_v30 }
  0xeb   : > { %1063 = vrot.lane.b32.xlu1 %v1061_v13, %s2602_s22  ;;  %935 = vrot.lane.b32.xlu0 %v933_v14, %s1754_s28  ;;  %v834_v14 = vstv %s2247_s18  ;;  %s1761_s18 = smov 46  }
  0xef   : > { %418 = vrot.lane.b32.xlu1 %v416_v17, %s1756_s4  ;;  %1193 = vrot.lane.b32.xlu0 %v1191_v18, %s2602_s22 }
  0xf3   : > { %685 = vrot.lane.b32.xlu1 %v683_v22, %s1755_s30  ;;  %557 = vrot.lane.b32.xlu0 %v555_v23, %s1756_s4  ;;  %v835_v22 = vmul.f32 %v834_v14, %v2133_v10 }
  0xf5   : > { %v2207_v32 = vpop.permute.xlu1 %332  ;;  %v312_v34 = vpop.permute.xlu0 %311 }
  0xf6   : > { %v313_v35 = vrot.slane %v312_v34, 1  ;;  %v334_v18 = vrot.slane %v2207_v32, 1 }
  0xf7   : > { %944 = vrot.lane.b32.xlu1 %v942_v27, %s1754_s28  ;;  %817 = vrot.lane.b32.xlu0 %v815_v28, %s1755_s30 }
  0xf8   : > { %v315_v39 = vsel %vm314_vm3, %v312_v34, %v313_v35  ;;  %v336_v31 = vsel %vm335_vm4, %v2207_v32, %v334_v18  ;;  %v1100_v32 = vstv %s2284_s9  ;;  %v981_v18 = vstv %s2313_s11  ;;  %s2532_s11 = scalar_lea.hbm %s2581_s3, %s1512_s25 }
  0xf9   : > { %v2219_v43 = vadd.f32 %v315_v39, %v2051_v20  ;;  %v2221_v44 = vpop.permute.xlu1 %616  ;;  %v458_v45 = vpop.permute.xlu0 %457  ;;  %v1092_v39 = vmul.f32 %v1091_v24, %v2133_v10 }
  0xfa   : > { %v459_v46 = vrot.slane %v458_v45, 1 }
  0xfb   : > { %1202 = vrot.lane.b32.xlu1 %v1200_v36, %s2602_s22  ;;  %1074 = vrot.lane.b32.xlu0 %v1072_v37, %s1754_s28  ;;  %s2245_s22 = sld [smem:[#allocation4 + $0x58]]  ;;  %v843_v36 = vstv %s2273_s29  ;;  %s211_s29 = scalar_lea.vmem [#allocation11], %s1407_s21 }
  0xfc   : > { %v460_v51 = vsel %vm314_vm3, %v458_v45, %v459_v46  ;;  %s1301_s23 = sshll.u32 %s211_s29, 4  ;;  %s2534_s23 = int_to_ptr.vmem [resolvable:$true] %s1301_s23 }
  0xfd   : > { %v2235_v20 = vadd.f32 %v460_v51, %v2062_v26  ;;  %v876_v54 = vpop.permute.xlu1 %875  ;;  %v597_v55 = vpop.permute.xlu0 %596  ;;  %v1080_v26 = vstv %s2214_s20  ;;  %s2331_s20 = sld [smem:[#allocation4 + $0x60]] }
  0xfe   : > { %v877_v56 = vrot.slane %v876_v54, 1  ;;  %v598_v58 = vrot.slane %v597_v55, 1  ;;  %v1081_v4 = vmul.f32 %v1080_v26, %v2150_v30 }
  0xff   : > { %566 = vrot.lane.b32.xlu1 %v564_v49, %s1756_s4  ;;  %428 = vrot.lane.b32.xlu0 %v426_v50, %s1756_s4 }
 0x100   : > { %v878_v60 = vsel %vm314_vm3, %v876_v54, %v877_v56  ;;  %v599_v61 = vsel %vm314_vm3, %v597_v55, %v598_v58  ;;  %v844_v54 = vmul.f32 %v843_v36, %v2150_v30 }
 0x101   : > { %v2250_v63 = vadd.f32 %v878_v60, %v2072_v33  ;;  %v2253_v0 = vadd.f32 %v599_v61, %v2086_v38  ;;  %v2255_v1 = vpop.permute.xlu1 %497  ;;  %v2257_v2 = vpop.permute.xlu0 %477  ;;  %v1210_v33 = vstv %s2232_s5  ;;  %v961_v13 = vstv %s2245_s22  ;;  %s1758_s5 = smov 51   ;;  %s1759_s22 = smov 49  }
 0x102   : > { %v1211_v11 = vmul.f32 %v1210_v33, %v2133_v10  ;;  %v962_v21 = vmul.f32 %v961_v13, %v2150_v30  ;;  %v479_v34 = vrot.slane %v2257_v2, 1  ;;  %v499_v49 = vrot.slane %v2255_v1, 1 }
 0x103   : > { %826 = vrot.lane.b32.xlu1 %v824_v59, %s1755_s30  ;;  %696 = vrot.lane.b32.xlu0 %v694_v48, %s1756_s4  ;;  %v1101_v60 = vmul.f32 %v1100_v32, %v2150_v30 }
 0x104   : > { %v480_v55 = vsel %vm335_vm4, %v2257_v2, %v479_v34  ;;  %v1120_v34 = vstv %s2331_s20  ;;  %s1287_s20 = scalar_lea.sflag [#allocation6], %s1959_s17 }
 0x105   : > { %v2269_v38 = vpop.permute.xlu1 %755  ;;  %v736_v8 = vpop.permute.xlu0 %735 }
 0x106   : > { %v737_v3 = vrot.slane %v736_v8, 1  ;;  %v757_v56 = vrot.slane %v2269_v38, 1 }
 0x107   : > { %1083 = vrot.lane.b32.xlu1 %v1081_v4, %s1754_s28  ;;  %955 = vrot.lane.b32.xlu0 %v953_v5, %s1755_s30  ;;  %v500_v4 = vsel %vm356_vm5, %v2255_v1, %v499_v49 }
 0x108   : > { %v738_v12 = vsel %vm314_vm3, %v736_v8, %v737_v3  ;;  %v758_v3 = vsel %vm335_vm4, %v2269_v38, %v757_v56 }
 0x109   : > { %v740_v15 = vadd.f32 %v738_v12, %v2101_v47  ;;  %v322_v16 = vpop.permute.xlu1 %321  ;;  %v2287_v17 = vpop.permute.xlu0 %353  ;;  %v1219_v47 = vstv %s2265_s27  ;;  %s1762_s27 = smov 45  }
 0x10a   : > { %v323_v19 = vrot.slane %v322_v16, 1  ;;  %v1220_v37 = vmul.f32 %v1219_v47, %v2150_v30 }
 0x10b   : > { %705 = vrot.lane.b32.xlu1 %v703_v9, %s1756_s4  ;;  %1213 = vrot.lane.b32.xlu0 %v1211_v11, %s1754_s28  ;;  %v355_v9 = vrot.slane %v2287_v17, 1 }
 0x10c   : > { %v324_v23 = vsel %vm314_vm3, %v322_v16, %v323_v19  ;;  %v1111_v16 = vstv %s2311_s10 }
 0x10d   : > { %v326_v25 = vadd.f32 %v324_v23, %v2219_v43  ;;  %v467_v27 = vpop.permute.xlu1 %466  ;;  %v487_v28 = vpop.permute.xlu0 %486  ;;  %v618_v43 = vrot.slane %v2221_v44, 1  ;;  %v357_v23 = vsel %vm356_vm5, %v2287_v17, %v355_v9 }
 0x10e   : > { %v468_v35 = vrot.slane %v467_v27, 1  ;;  %v488_v46 = vrot.slane %v487_v28, 1 }
 0x10f   : > { %964 = vrot.lane.b32.xlu1 %v962_v21, %s1755_s30  ;;  %837 = vrot.lane.b32.xlu0 %v835_v22, %s1756_s4  ;;  %v338_v40 = vadd.f32 %v336_v31, %v326_v25  ;;  %v619_v61 = vsel %vm335_vm4, %v2221_v44, %v618_v43  ;;  %v1121_v43 = vmul.f32 %v1120_v34, %v2150_v30 }
 0x110   : > { %v469_v45 = vsel %vm314_vm3, %v467_v27, %v468_v35  ;;  %v489_v26 = vsel %vm335_vm4, %v487_v28, %v488_v46  ;;  %v1112_v27 = vmul.f32 %v1111_v16, %v2133_v10  ;;  %v982_v28 = vmul.f32 %v981_v18, %v2150_v30 }
 0x111   : > { %v471_v50 = vadd.f32 %v469_v45, %v2235_v20  ;;  %v606_v51 = vpop.permute.xlu1 %605  ;;  %v745_v52 = vpop.permute.xlu0 %744  ;;  %v1231_v20 = vmul.f32 %v1230_v42, %v2133_v10  ;;  %v1239_v35 = vstv %s2333_s26  ;;  %s1670_s26 = scalar_lea.vmem %s2534_s23, 32 }
 0x112   : > { %v607_v58 = vrot.slane %v606_v51, 1  ;;  %v746_v59 = vrot.slane %v745_v52, 1  ;;  %v1240_v45 = vmul.f32 %v1239_v35, %v2150_v30  ;;  %p1671_p11 = scmp.ne.s32.totalorder %s2534_s23, %s1670_s26 }
 0x113   : > { %v482_v48 = vadd.f32 %v480_v55, %v471_v50  ;;  %1222 = vrot.lane.b32.xlu1 %v1220_v37, %s1754_s28  ;;  %1094 = vrot.lane.b32.xlu0 %v1092_v39, %s1755_s30  ;;  %s2347_s28 = sld [smem:[#allocation4 + $0x61]] }
 0x114   : > { %v608_v62 = vsel %vm314_vm3, %v606_v51, %v607_v58  ;;  %v747_v2 = vsel %vm314_vm3, %v745_v52, %v746_v59  ;;  %p1672_p6 = pnand %p1671_p11, %p2603_p4 }
 0x115   : > { %v491_v5 = vadd.f32 %v489_v26, %v482_v48  ;;  %v610_v6 = vadd.f32 %v608_v62, %v2253_v0  ;;  %v749_v33 = vadd.f32 %v747_v2, %v740_v15  ;;  %v343_v44 = vpop.permute.xlu1 %342  ;;  %v626_v8 = vpop.permute.xlu0 %625 }
 0x116   : > { %v344_v11 = vrot.slane %v343_v44, 1  ;;  %v627_v12 = vrot.slane %v626_v8, 1  ;;  %p1673_p9 = pneg %p1672_p6 }
 0x117   : > { %v621_v13 = vadd.f32 %v619_v61, %v610_v6  ;;  %975 = vrot.lane.b32.xlu1 %v973_v53, %s1756_s4  ;;  %846 = vrot.lane.b32.xlu0 %v844_v54, %s1756_s4  ;;  %v502_v1 = vadd.f32 %v500_v4, %v491_v5  ;;  %v760_v14 = vadd.f32 %v758_v3, %v749_v33 }
 0x118   : > { %v345_v0 = vsel %vm335_vm4, %v343_v44, %v344_v11  ;;  %v628_v15 = vsel %vm335_vm4, %v626_v8, %v627_v12 }
 0x119   : > { %v347_v38 = vadd.f32 %v345_v0, %v338_v40  ;;  %v630_v19 = vadd.f32 %v628_v15, %v621_v13  ;;  %v1015_v21 = vpop.permute.xlu1 %1014  ;;  %v885_v22 = vpop.permute.xlu0 %884  ;;  %v1259_v49 = vstv %s2347_s28  ;;  %s1674_s28 = sshll.u32 %s1763_s16, 4  ;;  %s1675_s28 = int_to_ptr.vmem [resolvable:$false] %s1674_s28 }
 0x11a   : > { %v1016_v47 = vrot.slane %v1015_v21, 1  ;;  %v886_v24 = vrot.slane %v885_v22, 1  ;;  %v1260_v55 = vmul.f32 %v1259_v49, %v2150_v30  ;;  %p1677_p12 = scmp.lt.s32.totalorder %s2534_s23, %s1675_s28 }
 0x11b   : > { %1233 = vrot.lane.b32.xlu1 %v1231_v20, %s1755_s30  ;;  %1103 = vrot.lane.b32.xlu0 %v1101_v60, %s1755_s30  ;;  %v359_v25 = vadd.f32 %v357_v23, %v347_v38 }
 0x11c   : > { %v1017_v29 = vsel %vm314_vm3, %v1015_v21, %v1016_v47  ;;  %v887_v31 = vsel %vm314_vm3, %v885_v22, %v886_v24 }
 0x11d   : > { %v1019_v17 = vadd.f32 %v1017_v29, %v2113_v57  ;;  %v889_v36 = vadd.f32 %v887_v31, %v2250_v63  ;;  %v507_v37 = vpop.permute.xlu1 %506  ;;  %v364_v39 = vpop.permute.xlu0 %363  ;;  %v1250_v57 = vstv %s2349_s6  ;;  %s1676_s6 = scalar_lea.vmem %s1675_s28, 64 }
 0x11e   : > { %v508_v40 = vrot.slane %v507_v37, 1  ;;  %v365_v42 = vrot.slane %v364_v39, 1  ;;  %v1251_v56 = vmul.f32 %v1250_v57, %v2133_v10  ;;  %p1678_p7 = scmp.lt.s32.totalorder %s1676_s6, %s1670_s26 }
 0x11f   : > { %1114 = vrot.lane.b32.xlu1 %v1112_v27, %s1756_s4  ;;  %984 = vrot.lane.b32.xlu0 %v982_v28, %s1756_s4 }
 0x120   : > { %v509_v46 = vsel %vm356_vm5, %v507_v37, %v508_v40  ;;  %v366_v32 = vsel %vm356_vm5, %v364_v39, %v365_v42  ;;  %p1679_p13 = por %p1678_p7, %p1677_p12 }
 0x121   : > { %v2371_v50 = vadd.f32 %v509_v46, %v502_v1  ;;  %v368_v63 = vadd.f32 %v366_v32, %v359_v25  ;;  %v765_v51 = vpop.permute.xlu1 %764  ;;  %v637_v52 = vpop.permute.xlu0 %636 }
 0x122   : > { %v766_v53 = vrot.slane %v765_v51, 1  ;;  %v638_v54 = vrot.slane %v637_v52, 1  ;;  %p1680_p3 = pnand %p1679_p13, %p1673_p9 }
 0x123   : > { %1123 = vrot.lane.b32.xlu1 %v1121_v43, %s1756_s4  ;;  %1242 = vrot.lane.b32.xlu0 %v1240_v45, %s1755_s30 }
 0x124   : > { %v767_v58 = vsel %vm335_vm4, %v765_v51, %v766_v53  ;;  %v639_v59 = vsel %vm356_vm5, %v637_v52, %v638_v54 }
 0x125   : > { %v769_v48 = vadd.f32 %v767_v58, %v760_v14  ;;  %v641_v20 = vadd.f32 %v639_v59, %v630_v19  ;;  %v1024_v60 = vpop.permute.xlu1 %1023  ;;  %v896_v61 = vpop.permute.xlu0 %895 }
 0x126   : > { %v1025_v26 = vrot.slane %v1024_v60, 1  ;;  %v897_v62 = vrot.slane %v896_v61, 1 }
 0x127   : > { %1262 = vrot.lane.b32.xlu1 %v1260_v55, %s1756_s4  ;;  %1253 = vrot.lane.b32.xlu0 %v1251_v56, %s1756_s4  ;;  %s1757_s4 = smov 50  }
 0x128   : > { %v1026_v2 = vsel %vm314_vm3, %v1024_v60, %v1025_v26  ;;  %v898_v30 = vsel %vm335_vm4, %v896_v61, %v897_v62 }
 0x129   : > { %v1028_v4 = vadd.f32 %v1026_v2, %v1019_v17  ;;  %v900_v10 = vadd.f32 %v898_v30, %v889_v36  ;;  %v377_v5 = vpop.permute.xlu1 %376  ;;  %v1154_v6 = vpop.permute.xlu0 %1153 }
 0x12a   : > { %v378_v33 = vrot.slane %v377_v5, 7  ;;  %v1155_v44 = vrot.slane %v1154_v6, 1 }
 0x12c   : > { %v380_v8 = vsel %vm379_vm6, %v378_v33, %v377_v5  ;;  %v1156_v3 = vsel %vm314_vm3, %v1154_v6, %v1155_v44 }
 0x12d   : > { %v2385_v9 = vadd.f32 %v380_v8, %v368_v63  ;;  %v1158_v11 = vadd.f32 %v1156_v3, %v2127_v7  ;;  %v646_v12 = vpop.permute.xlu1 %645  ;;  %v518_v13 = vpop.permute.xlu0 %517 }
 0x12e   : > { %v647_v1 = vrot.slane %v646_v12, 1  ;;  %v519_v6 = vrot.slane %v518_v13, 7 }
 0x130   : > { %v648_v14 = vsel %vm356_vm5, %v646_v12, %v647_v1 }
 0x131   : > { %v2389_v0 = vadd.f32 %v648_v14, %v641_v20  ;;  %v905_v15 = vpop.permute.xlu1 %904  ;;  %v778_v16 = vpop.permute.xlu0 %777 }
 0x132   : > { %v906_v18 = vrot.slane %v905_v15, 1  ;;  %v779_v38 = vrot.slane %v778_v16, 7 }
 0x134   : > { %v907_v19 = vsel %vm335_vm4, %v905_v15, %v906_v18  ;;  %v780_v21 = vsel %vm356_vm5, %v779_v38, %v778_v16 }
 0x135   : > { %v909_v22 = vadd.f32 %v907_v19, %v900_v10  ;;  %v782_v23 = vadd.f32 %v780_v21, %v769_v48  ;;  %v1163_v47 = vpop.permute.xlu1 %1162  ;;  %v1035_v24 = vpop.permute.xlu0 %1034 }
 0x136   : > { %v1164_v7 = vrot.slane %v1163_v47, 1  ;;  %v1036_v25 = vrot.slane %v1035_v24, 1 }
 0x138   : > { %v1165_v27 = vsel %vm314_vm3, %v1163_v47, %v1164_v7  ;;  %v1037_v28 = vsel %vm335_vm4, %v1035_v24, %v1036_v25 }
 0x139   : > { %v1167_v29 = vadd.f32 %v1165_v27, %v1158_v11  ;;  %v1039_v31 = vadd.f32 %v1037_v28, %v1028_v4  ;;  %v527_v34 = vpop.permute.xlu1 %526  ;;  %v387_v35 = vpop.permute.xlu0 %386  ;;  %v520_v11 = vsel %vm379_vm6, %v519_v6, %v518_v13 }
 0x13a   : > { %v528_v8 = vrot.slane %v527_v34, 7  ;;  %v388_v3 = vrot.slane %v387_v35, 7  ;;  %v522_v21 = vadd.f32 %v520_v11, %v2371_v50 }
 0x13c   : > { %v529_v16 = vsel %vm379_vm6, %v528_v8, %v527_v34  ;;  %v389_v18 = vsel %vm379_vm6, %v388_v3, %v387_v35 }
 0x13d   : > { %v787_v17 = vpop.permute.xlu1 %786  ;;  %v2395_v36 = vpop.permute.xlu0 %656  ;;  %v531_v24 = vadd.f32 %v529_v16, %v522_v21  ;;  %v391_v7 = vadd.f32 %v389_v18, %v2385_v9 }
 0x13e   : > { %v788_v37 = vrot.slane %v787_v17, 7  ;;  %v658_v34 = vrot.slane %v2395_v36, 7 }
 0x140   : > { %v789_v39 = vsel %vm356_vm5, %v788_v37, %v787_v17 }
 0x141   : > { %v2398_v40 = vadd.f32 %v789_v39, %v782_v23  ;;  %v1044_v42 = vpop.permute.xlu1 %1043  ;;  %v916_v43 = vpop.permute.xlu0 %915 }
 0x142   : > { %v1045_v45 = vrot.slane %v1044_v42, 1  ;;  %v917_v46 = vrot.slane %v916_v43, 7 }
 0x144   : > { %v1046_v32 = vsel %vm335_vm4, %v1044_v42, %v1045_v45  ;;  %v918_v49 = vsel %vm356_vm5, %v917_v46, %v916_v43 }
 0x145   : > { %v2402_v57 = vadd.f32 %v1046_v32, %v1039_v31  ;;  %v2404_v63 = vadd.f32 %v918_v49, %v909_v22  ;;  %v398_v51 = vpop.permute.xlu1 %397  ;;  %v1174_v52 = vpop.permute.xlu0 %1173 }
 0x146   : > { %v1175_v53 = vrot.slane %v1174_v52, 1  ;;  %v399_v12 = vrot.slane %v398_v51, 7 }
 0x148   : > { %v1176_v54 = vsel %vm335_vm4, %v1174_v52, %v1175_v53  ;;  %v401_v22 = vsel %vm400_vm7, %v399_v12, %v398_v51  ;;  %v659_v51 = vsel %vm379_vm6, %v658_v34, %v2395_v36 }
 0x149   : > { %v2407_v55 = vadd.f32 %v1176_v54, %v1167_v29  ;;  %v2409_v56 = vpop.permute.xlu1 %665  ;;  %v538_v58 = vpop.permute.xlu0 %537  ;;  %v403_v31 = vadd.f32 %v401_v22, %v391_v7  ;;  %v661_v8 = vadd.f32 %v659_v51, %v2389_v0 }
 0x14a   : > { %v539_v1 = vrot.slane %v538_v58, 7  ;;  %v667_v43 = vrot.slane %v2409_v56, 7 }
 0x14c   : > { %v540_v23 = vsel %vm400_vm7, %v539_v1, %v538_v58  ;;  %v668_v6 = vsel %vm379_vm6, %v667_v43, %v2409_v56 }
 0x14d   : > { %v2411_v59 = vpop.permute.xlu1 %924  ;;  %v2413_v48 = vpop.permute.xlu0 %797  ;;  %v542_v50 = vadd.f32 %v540_v23, %v531_v24  ;;  %v670_v11 = vadd.f32 %v668_v6, %v661_v8 }
 0x151   : > { %v2415_v20 = vpop.permute.xlu1 %1182  ;;  %v2417_v60 = vpop.permute.xlu0 %1054 }
 0x155   : > { %v547_v61 = vpop.permute.xlu1 %546  ;;  %v408_v26 = vpop.permute.xlu0 %407 }
 0x156   : > { %v548_v38 = vrot.slane %v547_v61, 7  ;;  %v409_v19 = vrot.slane %v408_v26, 7 }
 0x158   : > { %v549_v28 = vsel %vm400_vm7, %v548_v38, %v547_v61  ;;  %v410_v29 = vsel %vm400_vm7, %v409_v19, %v408_v26  ;;  %v799_v38 = vrot.slane %v2413_v48, 7 }
 0x159   : > { %v2419_v62 = vpop.permute.xlu1 %806  ;;  %v677_v2 = vpop.permute.xlu0 %676  ;;  %v551_v37 = vadd.f32 %v549_v28, %v542_v50  ;;  %v412_v39 = vadd.f32 %v410_v29, %v403_v31  ;;  %v1056_v31 = vrot.slane %v2417_v60, 7 }
 0x15a   : > { %v678_v52 = vrot.slane %v677_v2, 7  ;;  %v808_v22 = vrot.slane %v2419_v62, 7 }
 0x15c   : > { %v679_v36 = vsel %vm400_vm7, %v678_v52, %v677_v2  ;;  %v926_v2 = vrot.slane %v2411_v59, 7  ;;  %v809_v50 = vsel %vm379_vm6, %v808_v22, %v2419_v62 }
 0x15d   : > { %v2421_v30 = vpop.permute.xlu1 %1063  ;;  %v2423_v4 = vpop.permute.xlu0 %935  ;;  %v681_v18 = vadd.f32 %v679_v36, %v670_v11 }
 0x15e   : > { %v1065_v43 = vrot.slane %v2421_v30, 7 }
 0x161   : > { %v419_v10 = vpop.permute.xlu1 %418  ;;  %v2425_v5 = vpop.permute.xlu0 %1193 }
 0x162   : > { %v420_v13 = vrot.slane %v419_v10, 7 }
 0x164   : > { %v422_v35 = vsel %vm421_vm8, %v420_v13, %v419_v10 }
 0x165   : > { %v686_v33 = vpop.permute.xlu1 %685  ;;  %v558_v44 = vpop.permute.xlu0 %557  ;;  %v424_v32 = vadd.f32 %v422_v35, %v412_v39  ;;  %v927_v35 = vsel %vm356_vm5, %v926_v2, %v2411_v59  ;;  %v1057_v59 = vsel %vm356_vm5, %v1056_v31, %v2417_v60 }
 0x166   : > { %v559_v47 = vrot.slane %v558_v44, 7  ;;  %v1059_v60 = vadd.f32 %v1057_v59, %v2402_v57 }
 0x168   : > { %v560_v17 = vsel %vm421_vm8, %v559_v47, %v558_v44  ;;  %v687_v44 = vrot.slane %v686_v33, 7  ;;  %v800_v47 = vsel %vm379_vm6, %v799_v38, %v2413_v48  ;;  %v1184_v48 = vrot.slane %v2415_v20, 1 }
 0x169   : > { %v2428_v14 = vpop.permute.xlu1 %944  ;;  %v2430_v15 = vpop.permute.xlu0 %817  ;;  %v562_v49 = vadd.f32 %v560_v17, %v551_v37  ;;  %v802_v17 = vadd.f32 %v800_v47, %v2398_v40  ;;  %v937_v37 = vrot.slane %v2423_v4, 7 }
 0x16a   : > { %v688_v16 = vsel %vm400_vm7, %v687_v44, %v686_v33  ;;  %v819_v33 = vrot.slane %v2430_v15, 7  ;;  %v946_v40 = vrot.slane %v2428_v14, 7 }
 0x16b   : > { %v690_v19 = vadd.f32 %v688_v16, %v681_v18  ;;  %v938_v52 = vsel %vm379_vm6, %v937_v37, %v2423_v4 }
 0x16c   : > { %v820_v39 = vsel %vm400_vm7, %v819_v33, %v2430_v15  ;;  %v1185_v15 = vsel %vm335_vm4, %v2415_v20, %v1184_v48  ;;  %v947_v6 = vsel %vm379_vm6, %v946_v40, %v2428_v14 }
 0x16d   : > { %v2438_v25 = vpop.permute.xlu1 %1202  ;;  %v2440_v27 = vpop.permute.xlu0 %1074 }
 0x16e   : > { %v1076_v51 = vrot.slane %v2440_v27, 7  ;;  %v1204_v36 = vrot.slane %v2438_v25, 7 }
 0x170   : > { %v1077_v57 = vsel %vm379_vm6, %v1076_v51, %v2440_v27 }
 0x171   : > { %v567_v9 = vpop.permute.xlu1 %566  ;;  %v429_v42 = vpop.permute.xlu0 %428 }
 0x172   : > { %v568_v45 = vrot.slane %v567_v9, 7  ;;  %v430_v46 = vrot.slane %v429_v42, 7 }
 0x174   : > { %v569_v53 = vsel %vm421_vm8, %v568_v45, %v567_v9  ;;  %v431_v54 = vsel %vm421_vm8, %v430_v46, %v429_v42  ;;  %v811_v42 = vadd.f32 %v809_v50, %v802_v17 }
 0x175   : > { %v571_v58 = vadd.f32 %v569_v53, %v562_v49  ;;  %v433_v61 = vadd.f32 %v431_v54, %v424_v32  ;;  %v827_v26 = vpop.permute.xlu1 %826  ;;  %v697_v10 = vpop.permute.xlu0 %696  ;;  %v929_v32 = vadd.f32 %v927_v35, %v2404_v63 }
 0x176   : > { %v698_v3 = vrot.slane %v697_v10, 7  ;;  %v828_v34 = vrot.slane %v827_v26, 7  ;;  %v822_v49 = vadd.f32 %v820_v39, %v811_v42 }
 0x177   : > { %575 = vrot.lane.b32.xlu1 %v571_v58, %s1757_s4  ;;  %436 = vrot.lane.b32.xlu0 %v433_v61, %s1758_s5  ;;  %v1066_v58 = vsel %vm356_vm5, %v1065_v43, %v2421_v30  ;;  %v1195_v61 = vrot.slane %v2425_v5, 7  ;;  %v940_v8 = vadd.f32 %v938_v52, %v929_v32 }
 0x178   : > { %v699_v56 = vsel %vm421_vm8, %v698_v3, %v697_v10  ;;  %v829_v46 = vsel %vm400_vm7, %v828_v34, %v827_v26  ;;  %v1068_v38 = vadd.f32 %v1066_v58, %v1059_v60 }
 0x179   : > { %v2456_v12 = vpop.permute.xlu1 %1083  ;;  %v956_v1 = vpop.permute.xlu0 %955  ;;  %v701_v13 = vadd.f32 %v699_v56, %v690_v19  ;;  %v831_v63 = vadd.f32 %v829_v46, %v822_v49  ;;  %v949_v56 = vadd.f32 %v947_v6, %v940_v8 }
 0x17a   : > { %v957_v53 = vrot.slane %v956_v1, 7  ;;  %v1085_v20 = vrot.slane %v2456_v12, 7  ;;  %v1079_v47 = vadd.f32 %v1077_v57, %v1068_v38  ;;  %v573_v38 = vld [vmem:[#allocation8 + $0x1] ss:$8 sm:$0x3] }
 0x17c   : > { %v958_v30 = vsel %vm400_vm7, %v957_v53, %v956_v1  ;;  %v1086_v27 = vsel %vm379_vm6, %v1085_v20, %v2456_v12 }
 0x17d   : > { %v706_v0 = vpop.permute.xlu1 %705  ;;  %v2461_v21 = vpop.permute.xlu0 %1213  ;;  %v960_v33 = vadd.f32 %v958_v30, %v949_v56  ;;  %v1088_v50 = vadd.f32 %v1086_v27, %v1079_v47  ;;  %v853_v47 = vld [vmem:[#allocation8 + $0x3] ss:$8 sm:$0x3] }
 0x17e   : > { %v707_v23 = vrot.slane %v706_v0, 7  ;;  %v1215_v14 = vrot.slane %v2461_v21, 7 }
 0x180   : > { %v708_v24 = vsel %vm421_vm8, %v707_v23, %v706_v0  ;;  %v1196_v23 = vsel %vm356_vm5, %v1195_v61, %v2425_v5  ;;  %v1216_v12 = vsel %vm379_vm6, %v1215_v14, %v2461_v21  ;;  %v434_v14 = vld [vmem:[#allocation8] ss:$8 sm:$0x3] }
 0x181   : > { %v710_v7 = vadd.f32 %v708_v24, %v701_v13  ;;  %v965_v28 = vpop.permute.xlu1 %964  ;;  %v838_v29 = vpop.permute.xlu0 %837  ;;  %v1187_v13 = vadd.f32 %v1185_v15, %v2407_v55  ;;  %v1205_v24 = vsel %vm356_vm5, %v1204_v36, %v2438_v25 }
 0x182   : > { %v839_v9 = vrot.slane %v838_v29, 7  ;;  %v966_v44 = vrot.slane %v965_v28, 7 }
 0x183   : > { %714 = vrot.lane.b32.xlu0 %v710_v7, %s1759_s22  ;;  %v1198_v31 = vadd.f32 %v1196_v23, %v1187_v13  ;;  %v712_v23 = vld [vmem:[#allocation8 + $0x2] ss:$8 sm:$0x3] }
 0x184   : > { %v840_v54 = vsel %vm421_vm8, %v839_v9, %v838_v29  ;;  %v967_v2 = vsel %vm400_vm7, %v966_v44, %v965_v28 }
 0x185   : > { %v1223_v62 = vpop.permute.xlu1 %1222  ;;  %v1095_v45 = vpop.permute.xlu0 %1094  ;;  %v842_v3 = vadd.f32 %v840_v54, %v831_v63  ;;  %v969_v28 = vadd.f32 %v967_v2, %v960_v33  ;;  %v1207_v39 = vadd.f32 %v1205_v24, %v1198_v31 }
 0x186   : > { %v1096_v11 = vrot.slane %v1095_v45, 7  ;;  %v1224_v7 = vrot.slane %v1223_v62, 7 }
 0x187   : > { %v1218_v59 = vadd.f32 %v1216_v12, %v1207_v39  ;;  %v1269_v39 = vld [vmem:[#allocation8 + $0x6] ss:$8 sm:$0x3] }
 0x188   : > { %v1097_v29 = vsel %vm400_vm7, %v1096_v11, %v1095_v45  ;;  %v1225_v42 = vsel %vm379_vm6, %v1224_v7, %v1223_v62 }
 0x189   : > { %v976_v26 = vpop.permute.xlu1 %975  ;;  %v847_v10 = vpop.permute.xlu0 %846  ;;  %v1099_v25 = vadd.f32 %v1097_v29, %v1088_v50  ;;  %v1227_v52 = vadd.f32 %v1225_v42, %v1218_v59  ;;  %v991_v29 = vld [vmem:[#allocation8 + $0x4] ss:$8 sm:$0x3] }
 0x18a   : > { %v848_v4 = vrot.slane %v847_v10, 7  ;;  %v977_v16 = vrot.slane %v976_v26, 7 }
 0x18c   : > { %v849_v18 = vsel %vm421_vm8, %v848_v4, %v847_v10  ;;  %v978_v5 = vsel %vm421_vm8, %v977_v16, %v976_v26 }
 0x18d   : > { %v851_v19 = vadd.f32 %v849_v18, %v842_v3  ;;  %v1234_v0 = vpop.permute.xlu1 %1233  ;;  %v1104_v22 = vpop.permute.xlu0 %1103  ;;  %v980_v9 = vadd.f32 %v978_v5, %v969_v28  ;;  %v1130_v28 = vld [vmem:[#allocation8 + $0x5] ss:$8 sm:$0x3] }
 0x18e   : > { %v1105_v1 = vrot.slane %v1104_v22, 7  ;;  %v1235_v35 = vrot.slane %v1234_v0, 7 }
 0x18f   : > { %855 = vrot.lane.b32.xlu1 %v851_v19, %s1755_s30  ;;  %s1760_s30 = smov 47  }
 0x190   : > { %v1106_v17 = vsel %vm400_vm7, %v1105_v1, %v1104_v22  ;;  %v1236_v49 = vsel %vm400_vm7, %v1235_v35, %v1234_v0 }
 0x191   : > { %v1115_v34 = vpop.permute.xlu1 %1114  ;;  %v985_v55 = vpop.permute.xlu0 %984  ;;  %v1108_v40 = vadd.f32 %v1106_v17, %v1099_v25  ;;  %v1238_v60 = vadd.f32 %v1236_v49, %v1227_v52 }
 0x192   : > { %v1116_v48 = vrot.slane %v1115_v34, 7  ;;  %v986_v37 = vrot.slane %v985_v55, 7 }
 0x194   : > { %v1117_v43 = vsel %vm421_vm8, %v1116_v48, %v1115_v34  ;;  %v987_v45 = vsel %vm421_vm8, %v986_v37, %v985_v55 }
 0x195   : > { %v989_v21 = vadd.f32 %v987_v45, %v980_v9  ;;  %v1124_v46 = vpop.permute.xlu1 %1123  ;;  %v1243_v32 = vpop.permute.xlu0 %1242  ;;  %v1119_v53 = vadd.f32 %v1117_v43, %v1108_v40 }
 0x196   : > { %v1125_v51 = vrot.slane %v1124_v46, 7  ;;  %v1244_v15 = vrot.slane %v1243_v32, 7 }
 0x197   : > { %993 = vrot.lane.b32.xlu0 %v989_v21, %s1760_s30 }
 0x198   : > { %v1126_v54 = vsel %vm421_vm8, %v1125_v51, %v1124_v46  ;;  %v1245_v62 = vsel %vm400_vm7, %v1244_v15, %v1243_v32 }
 0x199   : > { %v1128_v58 = vadd.f32 %v1126_v54, %v1119_v53  ;;  %v1263_v61 = vpop.permute.xlu1 %1262  ;;  %v1254_v63 = vpop.permute.xlu0 %1253  ;;  %v1247_v6 = vadd.f32 %v1245_v62, %v1238_v60 }
 0x19a   : > { %v1264_v26 = vrot.slane %v1263_v61, 7  ;;  %v1255_v10 = vrot.slane %v1254_v63, 7 }
 0x19b   : > { %1132 = vrot.lane.b32.xlu1 %v1128_v58, %s1761_s18 }
 0x19c   : > { %v1256_v20 = vsel %vm421_vm8, %v1255_v10, %v1254_v63  ;;  %v1265_v4 = vsel %vm421_vm8, %v1264_v26, %v1263_v61 }
 0x19d   : > { %v1258_v44 = vadd.f32 %v1256_v20, %v1247_v6 }
 0x19f   : > { %v1267_v8 = vadd.f32 %v1265_v4, %v1258_v44 }
 0x1a1   : > { %1271 = vrot.lane.b32.xlu0 %v1267_v8, %s1762_s27 }
 0x1e9   : > { %v437_v36 = vpop.permute.xlu0 %436  ;;  %v576_v57 = vpop.permute.xlu1 %575 }
 0x1ea   : > { %v577_v30 = vrot.slane %v576_v57, 1  ;;  %v438_v11 = vrot.slane %v437_v36, 1 }
 0x1ec   : > { %v579_v56 = vsel %vm578_vm9, %v576_v57, %v577_v30  ;;  %v440_v19 = vsel %vm439_vm10, %v437_v36, %v438_v11 }
 0x1ed   : > { %v581_v1 = vmul.f32 %v579_v56, %v573_v38  ;;  %v442_v13 = vmul.f32 %v440_v19, %v434_v14 }
 0x1ef   : > { %v582_v50 = vadd.f32 %v581_v1, %v442_v13 }
 0x1f5   : > { %v715_v3 = vpop.permute.xlu0 %714 }
 0x1f6   : > { %v716_v18 = vrot.slane %v715_v3, 1 }
 0x1f8   : > { %v718_v27 = vsel %vm717_vm11, %v715_v3, %v716_v18 }
 0x1f9   : > { %v720_v24 = vmul.f32 %v718_v27, %v712_v23 }
 0x1fb   : > { %v721_v55 = vadd.f32 %v720_v24, %v582_v50 }
 0x201   : > { %v856_v16 = vpop.permute.xlu1 %855 }
 0x202   : > { %v857_v0 = vrot.slane %v856_v16, 1 }
 0x204   : > { %v858_v33 = vsel %vm400_vm7, %v856_v16, %v857_v0 }
 0x205   : > { %v860_v12 = vmul.f32 %v858_v33, %v853_v47 }
 0x207   : > { %v861_v17 = vadd.f32 %v860_v12, %v721_v55 }
 0x209   : > { %v994_v22 = vpop.permute.xlu0 %993 }
 0x20a   : > { %v995_v2 = vrot.slane %v994_v22, 1 }
 0x20c   : > { %v997_v5 = vsel %vm996_vm12, %v994_v22, %v995_v2 }
 0x20d   : > { %v1133_v7 = vpop.permute.xlu1 %1132  ;;  %v999_v35 = vmul.f32 %v997_v5, %v991_v29 }
 0x20e   : > { %v1134_v31 = vrot.slane %v1133_v7, 1 }
 0x20f   : > { %v1000_v9 = vadd.f32 %v999_v35, %v861_v17 }
 0x210   : > { %v1136_v34 = vsel %vm1135_vm13, %v1133_v7, %v1134_v31 }
 0x211   : > { %v1138_v48 = vmul.f32 %v1136_v34, %v1130_v28 }
 0x213   : > { %v1272_v37 = vpop.permute.xlu0 %1271  ;;  %v1139_v43 = vadd.f32 %v1138_v48, %v1000_v9 }
 0x214   : > { %v1273_v25 = vrot.slane %v1272_v37, 1 }
 0x216   : > { %v1275_v42 = vsel %vm1274_vm14, %v1272_v37, %v1273_v25 }
 0x217   : > { %v1277_v45 = vmul.f32 %v1275_v42, %v1269_v39 }
 0x219   : > { %v1278_v59 = vadd.f32 %v1277_v45, %v1139_v43 }
 0x21b   : > { %v1505_v40 = vmul.f32 -1.442695, %v1278_v59 }
 0x21d   : > { %1595 = vpow2.f32 %v1505_v40 }
 0x227   : > { %v1596_v21 = vpop.eup %1595 }
 0x228   : > { %v1282_v46 = vadd.f32 1.0, %v1596_v21 }
 0x22a   : > { %1597 = vrcp.f32 %v1282_v46 }
 0x234   : > { %v1598_v32 = vpop.eup %1597 }
 0x235   : > { %1285 = vst.msk [vmem:[%s211_s29] sm:$0x3] %vm1971_vm2, %v1598_v32 }
 0x236   : > { %1683 = shalt.err (!%p1680_p3)
}
 0x237   : > { %s1684_s17 = scalar_lea.hbm %s2532_s11, 32  ;;  %s1688_s22 = scalar_lea.hbm %s2581_s3, 64 }
 0x238   : > { %p1685_p1 = scmp.ne.s32.totalorder %s2532_s11, %s1684_s17  ;;  %p1689_p2 = scmp.lt.u32.totalorder %s2532_s11, %s2581_s3 }
 0x239   : > { %p1690_p0 = scmp.lt.u32.totalorder %s1688_s22, %s1684_s17  ;;  %p1692_p11 = scmp.lt.u32.totalorder %s1684_s17, %s2532_s11 }
 0x23a   : > { %p1686_p5 = pnand %p1685_p1, %p2603_p4 }
 0x23b   : > { %p1691_p8 = por %p1690_p0, %p1689_p2 }
 0x23c   : > { %p1687_p10 = pneg %p1686_p5 }
 0x23d   : > { %p1693_p6 = por %p1692_p11, %p1691_p8 }
 0x23f   : > { %p1694_p9 = pnand %p1693_p6, %p1687_p10 }
 0x241   : > { %1697 = shalt.err (!%p1694_p9)
}
 0x242   : > { %1523 = dma.vmem_to_hbm [thread:$0]  (%p2603_p4), %s2534_s23, 32, %s2532_s11, %s1287_s20  }
 0x243 PF: > { %s1313_s27 = sand.u32 1, %s1732_s12   ;;  %p2604_p12 = scmp.ne.s32.totalorder %s2588_s19, 0 }
 0x244   : > { %p2605_p7 = scmp.ge.s32.totalorder %s1744_s15, 2  ;;  %s1314_s21 = scalar_lea.sflag [#allocation6], %s1313_s27 }
 0x246   : > { %p1537_p13 = pnand %p2605_p7, %p2604_p12 }
 0x248   : > { %1727 = dma.done.wait (!%p1537_p13), %s1314_s21, 32  }
 0x249   : > { %1729 = vsyncadd (!%p1537_p13), %s1314_s21, 4294967264  ;;  %p18_p3 = scmp.ge.s32.totalorder %s1840_s24, 4   ;;  %s2606_s12 = smov %s1736_s13 }
 0x24a   : > { %s2607_s13 = smov %s1740_s14  ;;  %s2608_s14 = smov %s1898_s7 }
 0x24b   : > { %s2609_s15 = smov %s1840_s24  ;;  %20 = sbr.rel (!%p18_p3) target bundleno = 7 (0x7), region = 93 }
 0x252   :  { %1319 = vsyncpa [#allocation5], 1 }
 0x253   :  { %1321 = vsyncpa [#allocation5 + $0x1], 1 }
 0x254   :  { %1322 = vsyncpa [#allocation10], 1 }
 0x255   :  { %1324 = vsyncpa [#allocation10 + $0x1], 1 }
 0x256   :  { %1325 = vsyncpa [#allocation6], 1 }
 0x257   :  { %1327 = vsyncpa [#allocation6 + $0x1], 1 }
 0x258   :  { %1328 = vsyncpa [#allocation7], 1 }
 0x259   :  { %1330 = vsyncpa [#allocation7 + $0x1], 1 }

</bundles_post_ra>
